<compile_context>
chip_gen: v7x
topology: tpu7x:2x2x1
jax: 0.10.0
libtpu: 0.0.40
codegen_flags: <defaults>
</compile_context>

<pallas_src>
import functools

import jax
import jax.numpy as jnp
from jax import lax
from jax.experimental import pallas as pl
from jax.experimental.pallas import tpu as pltpu


def _simple_attention_kernel(q_ref, k_ref, v_ref,
                             wq_ref, wk_ref, wv_ref, wo_ref,
                             out_ref, wts_ref, *, lk_valid, use_bf16):
    """One grid step == one block of `batch_block` examples, resident in VMEM.

    Weight refs are already (in_features, out_features); no transposes inside.
    All padded dims are lane/sublane aligned, so the reshapes below are free.
    """
    bt, lq, dq = q_ref.shape
    _, lk, dk = k_ref.shape
    _, _, dv = v_ref.shape
    d = wq_ref.shape[1]

    # Fold batch into M so projections are (bt*L, Din) @ (Din, D) — bigger MXU
    # tiles.  Lq % 8 == 0 and Din % 128 == 0, so these reshapes are layout no-ops.
    q2 = q_ref[...].reshape(bt * lq, dq)
    k2 = k_ref[...].reshape(bt * lk, dk)
    v2 = v_ref[...].reshape(bt * lk, dv)

    # Q/K projections and QK^T stay f32 (attention weights are checked @ 1e-5).
    qp = jnp.dot(q2, wq_ref[...], preferred_element_type=jnp.float32).reshape(bt, lq, d)
    kp = jnp.dot(k2, wk_ref[...], preferred_element_type=jnp.float32).reshape(bt, lk, d)

    # V projection only feeds the (looser-tolerance) output: bf16 operands, f32 acc.
    if use_bf16:
        vp = jnp.dot(v2.astype(jnp.bfloat16), wv_ref[...],
                     preferred_element_type=jnp.float32).reshape(bt, lk, d)
    else:
        vp = jnp.dot(v2, wv_ref[...],
                     preferred_element_type=jnp.float32).reshape(bt, lk, d)

    # logits[b] = qp[b] @ kp[b]^T — contract feature dims directly, no explicit
    # transpose of kp.  (No 1/sqrt(d) scale, matching the PyTorch module.)
    logits = lax.dot_general(
        qp, kp, dimension_numbers=(((2,), (2,)), ((0,), (0,))),
        preferred_element_type=jnp.float32)                      # (bt, lq, lk)

    # Mask padded key columns so the softmax matches the unpadded math exactly.
    if lk_valid < lk:
        col = lax.broadcasted_iota(jnp.int32, logits.shape, 2)
        logits = jnp.where(col < lk_valid, logits, -jnp.inf)
    # TODO(synk): optional attn_mask / bias terms not wired in (forward called with None).

    # softmax along the key axis; exact reciprocal (weights output checked @1e-5).
    m = jnp.max(logits, axis=-1, keepdims=True)
    p = jnp.exp(logits - m)
    w = p * pl.reciprocal(jnp.sum(p, axis=-1, keepdims=True), approx=False)

    # out[b] = w[b] @ vp[b], then the output projection (Wo already transposed).
    # These two matmuls only affect `out` -> bf16 operands, f32 accumulation.
    mx_dt = jnp.bfloat16 if use_bf16 else jnp.float32
    o = lax.dot_general(
        w.astype(mx_dt), vp.astype(mx_dt),
        dimension_numbers=(((2,), (1,)), ((0,), (0,))),
        preferred_element_type=jnp.float32)                      # (bt, lq, d)
    o = jnp.dot(o.reshape(bt * lq, d).astype(mx_dt), wo_ref[...],
                preferred_element_type=jnp.float32)

    out_ref[...] = o.reshape(bt, lq, d).astype(out_ref.dtype)
    wts_ref[...] = w.astype(wts_ref.dtype)


def _round_up(x, m):
    return ((x + m - 1) // m) * m


def _pad_to(x, shape):
    pads = [(0, t - s) for s, t in zip(x.shape, shape)]
    if all(p == (0, 0) for p in pads):
        return x
    return jnp.pad(x, pads)


def simple_attention(query, key, value, wq, wk, wv, wo, *,
                     batch_block=None, mxu_bf16=True):
    """query: (B, Lq, Dq), key: (B, Lk, Dk), value: (B, Lk, Dv).
    wq: (D, Dq), wk: (D, Dk), wv: (D, Dv), wo: (D, D) — PyTorch (out, in) layout.
    Returns (out (B, Lq, D) in query.dtype, weights (B, Lq, Lk) float32).

    batch_block: batch elements per grid step.  Default: the largest divisor
    of B that (a) keeps the per-step VMEM estimate under ~half the scoped VMEM
    limit and (b) leaves at least 2 pipelined 'parallel' grid steps (DMA/compute
    overlap + megacore sharding on v7x).
    """
    B, Lq, Dq = query.shape
    _, Lk, Dk = key.shape
    _, _, Dv = value.shape
    D = wq.shape[0]

    # ---- lane/sublane-aligned padded sizes (zero padding is exact math) ----
    Lq_p = _round_up(Lq, 8)        # sublane
    Lk_p = _round_up(Lk, 128)      # lane: wts last dim + softmax axis
    D_p = _round_up(D, 128)        # lane: out last dim / MXU N
    Dq_p = _round_up(Dq, 128)
    Dk_p = _round_up(Dk, 128)
    Dv_p = _round_up(Dv, 128)

    q_p = _pad_to(query, (B, Lq_p, Dq_p))
    k_p = _pad_to(key, (B, Lk_p, Dk_p))
    v_p = _pad_to(value, (B, Lk_p, Dv_p))

    # Pre-transpose weights once in XLA -> (in_features, out_features); the
    # kernel then does plain x @ W with no per-step XLU transposes.  Wv/Wo are
    # shipped in bf16 when the bf16-MXU path is on (halves their DMA).
    wq_t = _pad_to(wq.T, (Dq_p, D_p))
    wk_t = _pad_to(wk.T, (Dk_p, D_p))
    wv_t = _pad_to(wv.T, (Dv_p, D_p))
    wo_t = _pad_to(wo.T, (D_p, D_p))
    if mxu_bf16:
        wv_t = wv_t.astype(jnp.bfloat16)
        wo_t = wo_t.astype(jnp.bfloat16)

    in_bytes = jnp.dtype(query.dtype).itemsize
    out_bytes = in_bytes
    w_io_bytes = 2 if mxu_bf16 else 4

    def vmem_bytes(bt):
        # double-buffered activation tiles (inputs + both outputs)
        io = 2 * bt * (Lq_p * Dq_p + Lk_p * Dk_p + Lk_p * Dv_p) * in_bytes
        io += 2 * bt * (Lq_p * D_p * out_bytes + Lq_p * Lk_p * 4)
        # grid-invariant weight tiles (conservatively counted double-buffered)
        # TODO(synk): pl.Buffered(1) pipeline_mode on the weight specs would halve
        # this; left at default buffering and double-counted in the budget instead.
        wbytes = 2 * ((Dq_p + Dk_p) * D_p * 4 + (Dv_p + D_p) * D_p * w_io_bytes)
        # f32 intermediates materialized by the body
        inter = bt * (Lq_p + 2 * Lk_p) * D_p * 4          # qp / kp / vp
        inter += 3 * bt * Lq_p * Lk_p * 4                  # logits / p / w
        inter += 2 * bt * Lq_p * D_p * 4                   # o, projected o
        if mxu_bf16:
            inter += bt * (Lq_p * Lk_p + Lk_p * D_p + Lq_p * D_p) * 2  # bf16 casts
        return io + wbytes + inter

    # ---- VMEM limit (explicit: v5e default scoped cap is only 16 MiB) ------
    try:
        info = pltpu.get_tpu_info()
        vmem_cap = getattr(info, "vmem_capacity_bytes", None) or (64 << 20)
    except Exception:  # non-TPU tracing environments
        vmem_cap = 64 << 20
    vmem_limit = min((vmem_cap * 3) // 4, 96 << 20)   # headroom vs physical (64 MiB on v7x)
    budget = vmem_limit // 2

    if batch_block is None:
        divisors = [d for d in range(1, B + 1) if B % d == 0]
        min_steps = 2 if B >= 2 else 1
        fitting = [d for d in divisors if vmem_bytes(d) <= budget]
        preferred = [d for d in fitting if B // d >= min_steps]
        if preferred:
            batch_block = max(preferred)   # fattest tile that still pipelines
        elif fitting:
            batch_block = max(fitting)
        else:
            batch_block = 1
    assert B % batch_block == 0, "batch_block must divide the batch size"
    n_steps = B // batch_block

    batch_spec = lambda l, d: pl.BlockSpec((batch_block, l, d), lambda b: (b, 0, 0))
    weight_spec = lambda r, c: pl.BlockSpec((r, c), lambda b: (0, 0))

    kernel = functools.partial(_simple_attention_kernel,
                               lk_valid=Lk, use_bf16=mxu_bf16)

    out_p, wts_p = pl.pallas_call(
        kernel,
        out_shape=(
            jax.ShapeDtypeStruct((B, Lq_p, D_p), query.dtype),
            # TODO(synk): wts kept f32 (checked @1e-5); bf16 would halve its HBM writeback.
            jax.ShapeDtypeStruct((B, Lq_p, Lk_p), jnp.float32),
        ),
        grid_spec=pltpu.PrefetchScalarGridSpec(
            num_scalar_prefetch=0,
            grid=(n_steps,),
            in_specs=[
                batch_spec(Lq_p, Dq_p),     # query
                batch_spec(Lk_p, Dk_p),     # key
                batch_spec(Lk_p, Dv_p),     # value
                weight_spec(Dq_p, D_p),     # Wq^T (in, out)
                weight_spec(Dk_p, D_p),     # Wk^T
                weight_spec(Dv_p, D_p),     # Wv^T (bf16 when mxu_bf16)
                weight_spec(D_p, D_p),      # Wo^T (bf16 when mxu_bf16)
            ],
            out_specs=[
                batch_spec(Lq_p, D_p),      # out    (lane-dense: D_p % 128 == 0)
                batch_spec(Lq_p, Lk_p),     # weights (lane-dense: Lk_p % 128 == 0)
            ],
        ),
        compiler_params=pltpu.CompilerParams(
            dimension_semantics=("parallel",),
            vmem_limit_bytes=vmem_limit),
    )(q_p, k_p, v_p, wq_t, wk_t, wv_t, wo_t)

    # Strip the alignment padding back off.
    return out_p[:, :Lq, :D], wts_p[:, :Lq, :Lk]


def _reference(query, key, value, wq, wk, wv, wo):
    q = query @ wq.T
    k = key @ wk.T
    v = value @ wv.T
    logits = jnp.einsum("bqd,bkd->bqk", q, k)
    w = jax.nn.softmax(logits, axis=-1)
    o = jnp.einsum("bqk,bkd->bqd", w, v)
    o = o @ wo.T
    return o, w


if __name__ == "__main__":
    # Small shapes consistent with the module (query_size=key_size=value_size).
    B, Lq, Lk, D = 4, 8, 8, 32

    key0 = jax.random.PRNGKey(0)
    ks = jax.random.split(key0, 7)
    query = jax.random.normal(ks[0], (B, Lq, D), dtype=jnp.float32)
    key_t = jax.random.normal(ks[1], (B, Lk, D), dtype=jnp.float32)
    value = jax.random.normal(ks[2], (B, Lk, D), dtype=jnp.float32)

    # Deterministic parameter init (roughly nn.Linear's kaiming-uniform scale),
    # stored in the PyTorch (out_features, in_features) layout.
    scale = 1.0 / jnp.sqrt(D)
    wq = jax.random.uniform(ks[3], (D, D), minval=-scale, maxval=scale, dtype=jnp.float32)
    wk = jax.random.uniform(ks[4], (D, D), minval=-scale, maxval=scale, dtype=jnp.float32)
    wv = jax.random.uniform(ks[5], (D, D), minval=-scale, maxval=scale, dtype=jnp.float32)
    wo = jax.random.uniform(ks[6], (D, D), minval=-scale, maxval=scale, dtype=jnp.float32)

    out, wts = simple_attention(query, key_t, value, wq, wk, wv, wo)
    jax.block_until_ready((out, wts))

    ref_out, ref_wts = _reference(query, key_t, value, wq, wk, wv, wo)
    # Attention weights take the pure-f32 path -> tight tolerance.
    assert jnp.allclose(wts, ref_wts, atol=1e-5, rtol=1e-5), "weights mismatch"
    # Output uses bf16 MXU operands (f32 accumulation) on the V / Wo matmuls.
    assert jnp.allclose(out, ref_out, atol=2e-2, rtol=2e-2), "output mismatch"

    print("KERNEL_OK")
</pallas_src>

<mosaic_0001>
module attributes {stable_mosaic.version = 11 : i64} {
  func.func @_simple_attention_kernel(%arg0: i32, %arg1: memref<2x8x128xf32, #tpu.memory_space<vmem>>, %arg2: memref<2x128x128xf32, #tpu.memory_space<vmem>>, %arg3: memref<2x128x128xf32, #tpu.memory_space<vmem>>, %arg4: memref<128x128xf32, #tpu.memory_space<vmem>>, %arg5: memref<128x128xf32, #tpu.memory_space<vmem>>, %arg6: memref<128x128xbf16, #tpu.memory_space<vmem>>, %arg7: memref<128x128xbf16, #tpu.memory_space<vmem>>, %arg8: memref<2x8x128xf32, #tpu.memory_space<vmem>>, %arg9: memref<2x8x128xf32, #tpu.memory_space<vmem>>) attributes {dimension_semantics = [#tpu.dimension_semantics<parallel>], iteration_bounds = array<i64: 2>, scalar_prefetch = 0 : i64, scratch_operands = 0 : i64, tpu.core_type = #tpu.core_type<tc>, window_params = [{transform_indices = @transform_0, window_bounds = array<i64: 2, 8, 128>}, {transform_indices = @transform_1, window_bounds = array<i64: 2, 128, 128>}, {transform_indices = @transform_2, window_bounds = array<i64: 2, 128, 128>}, {pipeline_mode = #tpu.pipeline_mode<synchronous>, transform_indices = @transform_3, window_bounds = array<i64: 128, 128>}, {pipeline_mode = #tpu.pipeline_mode<synchronous>, transform_indices = @transform_4, window_bounds = array<i64: 128, 128>}, {pipeline_mode = #tpu.pipeline_mode<synchronous>, transform_indices = @transform_5, window_bounds = array<i64: 128, 128>}, {pipeline_mode = #tpu.pipeline_mode<synchronous>, transform_indices = @transform_6, window_bounds = array<i64: 128, 128>}, {transform_indices = @transform_7, window_bounds = array<i64: 2, 8, 128>}, {transform_indices = @transform_8, window_bounds = array<i64: 2, 8, 128>}]} {
    %c0 = arith.constant 0 : index
    %c0_0 = arith.constant 0 : index
    %c0_1 = arith.constant 0 : index
    %0 = vector.load %arg1[%c0, %c0_0, %c0_1] : memref<2x8x128xf32, #tpu.memory_space<vmem>>, vector<2x8x128xf32>
    %1 = vector.shape_cast %0 : vector<2x8x128xf32> to vector<16x128xf32>
    %c0_2 = arith.constant 0 : index
    %c0_3 = arith.constant 0 : index
    %c0_4 = arith.constant 0 : index
    %2 = vector.load %arg2[%c0_2, %c0_3, %c0_4] : memref<2x128x128xf32, #tpu.memory_space<vmem>>, vector<2x128x128xf32>
    %3 = vector.shape_cast %2 : vector<2x128x128xf32> to vector<256x128xf32>
    %c0_5 = arith.constant 0 : index
    %c0_6 = arith.constant 0 : index
    %c0_7 = arith.constant 0 : index
    %4 = vector.load %arg3[%c0_5, %c0_6, %c0_7] : memref<2x128x128xf32, #tpu.memory_space<vmem>>, vector<2x128x128xf32>
    %5 = vector.shape_cast %4 : vector<2x128x128xf32> to vector<256x128xf32>
    %c0_8 = arith.constant 0 : index
    %c0_9 = arith.constant 0 : index
    %6 = vector.load %arg4[%c0_8, %c0_9] : memref<128x128xf32, #tpu.memory_space<vmem>>, vector<128x128xf32>
    %cst = arith.constant dense<0.000000e+00> : vector<16x128xf32>
    %7 = tpu.matmul %1, %6, %cst {dimension_numbers = #tpu.dot_dimension_numbers<[1], [0], [0], [1], [0, 0, 1, 1], [], []>} : vector<16x128xf32>, vector<128x128xf32>, vector<16x128xf32> -> vector<16x128xf32>
    %8 = vector.shape_cast %7 : vector<16x128xf32> to vector<2x8x128xf32>
    %c0_10 = arith.constant 0 : index
    %c0_11 = arith.constant 0 : index
    %9 = vector.load %arg5[%c0_10, %c0_11] : memref<128x128xf32, #tpu.memory_space<vmem>>, vector<128x128xf32>
    %cst_12 = arith.constant dense<0.000000e+00> : vector<256x128xf32>
    %10 = tpu.matmul %3, %9, %cst_12 {dimension_numbers = #tpu.dot_dimension_numbers<[1], [0], [0], [1], [0, 0, 1, 1], [], []>} : vector<256x128xf32>, vector<128x128xf32>, vector<256x128xf32> -> vector<256x128xf32>
    %11 = vector.shape_cast %10 : vector<256x128xf32> to vector<2x128x128xf32>
    %12 = arith.truncf %5 : vector<256x128xf32> to vector<256x128xbf16>
    %c0_13 = arith.constant 0 : index
    %c0_14 = arith.constant 0 : index
    %13 = vector.load %arg6[%c0_13, %c0_14] : memref<128x128xbf16, #tpu.memory_space<vmem>>, vector<128x128xbf16>
    %cst_15 = arith.constant dense<0.000000e+00> : vector<256x128xf32>
    %14 = tpu.matmul %12, %13, %cst_15 {dimension_numbers = #tpu.dot_dimension_numbers<[1], [0], [0], [1], [0, 0, 1, 1], [], []>} : vector<256x128xbf16>, vector<128x128xbf16>, vector<256x128xf32> -> vector<256x128xf32>
    %15 = vector.shape_cast %14 : vector<256x128xf32> to vector<2x128x128xf32>
    %cst_16 = arith.constant dense<0.000000e+00> : vector<2x8x128xf32>
    %16 = tpu.matmul %8, %11, %cst_16 {dimension_numbers = #tpu.dot_dimension_numbers<[2], [2], [1], [1], [0, 0, 0, 1, 1, 1], [0], [0]>} : vector<2x8x128xf32>, vector<2x128x128xf32>, vector<2x8x128xf32> -> vector<2x8x128xf32>
    %17 = tpu.iota {dimensions = array<i32: 2>} : vector<2x8x128xi32>
    %c8_i32 = arith.constant 8 : i32
    %18 = vector.broadcast %c8_i32 : i32 to vector<2x8x128xi32>
    %19 = arith.cmpi slt, %17, %18 : vector<2x8x128xi32>
    %cst_17 = arith.constant 0xFF800000 : f32
    %20 = vector.broadcast %cst_17 : f32 to vector<2x8x128xf32>
    %21 = arith.select %19, %16, %20 : vector<2x8x128xi1>, vector<2x8x128xf32>
    %cst_18 = arith.constant dense<0xFF800000> : vector<2x8xf32>
    %22 = vector.multi_reduction <maximumf>, %21, %cst_18 [2] : vector<2x8x128xf32> to vector<2x8xf32>
    %23 = vector.shape_cast %22 : vector<2x8xf32> to vector<2x8x1xf32>
    %24 = vector.broadcast %23 : vector<2x8x1xf32> to vector<2x8x128xf32>
    %25 = arith.subf %21, %24 : vector<2x8x128xf32>
    %26 = math.exp %25 : vector<2x8x128xf32>
    %cst_19 = arith.constant dense<0.000000e+00> : vector<2x8xf32>
    %27 = vector.multi_reduction <add>, %26, %cst_19 [2] : vector<2x8x128xf32> to vector<2x8xf32>
    %28 = vector.shape_cast %27 : vector<2x8xf32> to vector<2x8x1xf32>
    %29 = tpu.reciprocal %28 : vector<2x8x1xf32> -> vector<2x8x1xf32>
    %30 = vector.broadcast %29 : vector<2x8x1xf32> to vector<2x8x128xf32>
    %31 = arith.mulf %26, %30 : vector<2x8x128xf32>
    %32 = arith.truncf %31 : vector<2x8x128xf32> to vector<2x8x128xbf16>
    %33 = arith.truncf %15 : vector<2x128x128xf32> to vector<2x128x128xbf16>
    %cst_20 = arith.constant dense<0.000000e+00> : vector<2x8x128xf32>
    %34 = tpu.matmul %32, %33, %cst_20 {dimension_numbers = #tpu.dot_dimension_numbers<[2], [1], [1], [2], [0, 0, 0, 1, 1, 2], [0], [0]>} : vector<2x8x128xbf16>, vector<2x128x128xbf16>, vector<2x8x128xf32> -> vector<2x8x128xf32>
    %35 = vector.shape_cast %34 : vector<2x8x128xf32> to vector<16x128xf32>
    %36 = arith.truncf %35 : vector<16x128xf32> to vector<16x128xbf16>
    %c0_21 = arith.constant 0 : index
    %c0_22 = arith.constant 0 : index
    %37 = vector.load %arg7[%c0_21, %c0_22] : memref<128x128xbf16, #tpu.memory_space<vmem>>, vector<128x128xbf16>
    %cst_23 = arith.constant dense<0.000000e+00> : vector<16x128xf32>
    %38 = tpu.matmul %36, %37, %cst_23 {dimension_numbers = #tpu.dot_dimension_numbers<[1], [0], [0], [1], [0, 0, 1, 1], [], []>} : vector<16x128xbf16>, vector<128x128xbf16>, vector<16x128xf32> -> vector<16x128xf32>
    %39 = vector.shape_cast %38 : vector<16x128xf32> to vector<2x8x128xf32>
    %c0_24 = arith.constant 0 : index
    %c0_25 = arith.constant 0 : index
    %c0_26 = arith.constant 0 : index
    %40 = vector.load %arg8[%c0_24, %c0_25, %c0_26] : memref<2x8x128xf32, #tpu.memory_space<vmem>>, vector<2x8x128xf32>
    tpu.vector_store %arg8[%c0_24, %c0_25, %c0_26], %39 {strides = array<i32>} : memref<2x8x128xf32, #tpu.memory_space<vmem>>, vector<2x8x128xf32>,
    %c0_27 = arith.constant 0 : index
    %c0_28 = arith.constant 0 : index
    %c0_29 = arith.constant 0 : index
    %41 = vector.load %arg9[%c0_27, %c0_28, %c0_29] : memref<2x8x128xf32, #tpu.memory_space<vmem>>, vector<2x8x128xf32>
    tpu.vector_store %arg9[%c0_27, %c0_28, %c0_29], %31 {strides = array<i32>} : memref<2x8x128xf32, #tpu.memory_space<vmem>>, vector<2x8x128xf32>,
    return
  }
  func.func @transform_0(%arg0: i32) -> (i32, i32, i32) {
    %c0_i32 = arith.constant 0 : i32
    %c0_i32_0 = arith.constant 0 : i32
    %c0_i32_1 = arith.constant 0 : i32
    return %arg0, %c0_i32, %c0_i32_0 : i32, i32, i32
  }
  func.func @transform_1(%arg0: i32) -> (i32, i32, i32) {
    %c0_i32 = arith.constant 0 : i32
    %c0_i32_0 = arith.constant 0 : i32
    %c0_i32_1 = arith.constant 0 : i32
    return %arg0, %c0_i32, %c0_i32_0 : i32, i32, i32
  }
  func.func @transform_2(%arg0: i32) -> (i32, i32, i32) {
    %c0_i32 = arith.constant 0 : i32
    %c0_i32_0 = arith.constant 0 : i32
    %c0_i32_1 = arith.constant 0 : i32
    return %arg0, %c0_i32, %c0_i32_0 : i32, i32, i32
  }
  func.func @transform_3(%arg0: i32) -> (i32, i32) {
    %c0_i32 = arith.constant 0 : i32
    %c0_i32_0 = arith.constant 0 : i32
    %c0_i32_1 = arith.constant 0 : i32
    return %c0_i32, %c0_i32_0 : i32, i32
  }
  func.func @transform_4(%arg0: i32) -> (i32, i32) {
    %c0_i32 = arith.constant 0 : i32
    %c0_i32_0 = arith.constant 0 : i32
    %c0_i32_1 = arith.constant 0 : i32
    return %c0_i32, %c0_i32_0 : i32, i32
  }
  func.func @transform_5(%arg0: i32) -> (i32, i32) {
    %c0_i32 = arith.constant 0 : i32
    %c0_i32_0 = arith.constant 0 : i32
    %c0_i32_1 = arith.constant 0 : i32
    return %c0_i32, %c0_i32_0 : i32, i32
  }
  func.func @transform_6(%arg0: i32) -> (i32, i32) {
    %c0_i32 = arith.constant 0 : i32
    %c0_i32_0 = arith.constant 0 : i32
    %c0_i32_1 = arith.constant 0 : i32
    return %c0_i32, %c0_i32_0 : i32, i32
  }
  func.func @transform_7(%arg0: i32) -> (i32, i32, i32) {
    %c0_i32 = arith.constant 0 : i32
    %c0_i32_0 = arith.constant 0 : i32
    %c0_i32_1 = arith.constant 0 : i32
    return %arg0, %c0_i32, %c0_i32_0 : i32, i32, i32
  }
  func.func @transform_8(%arg0: i32) -> (i32, i32, i32) {
    %c0_i32 = arith.constant 0 : i32
    %c0_i32_0 = arith.constant 0 : i32
    %c0_i32_1 = arith.constant 0 : i32
    return %arg0, %c0_i32, %c0_i32_0 : i32, i32, i32
  }
}

</mosaic_0001>

<bundles_post_ra>
// kernel: tpu_custom_call.1
= control target key start
LH: loop header
LB: loop body
LE: loop exit
PB: predicated region body
PF: predicated region fallthrough
CT: control target
= control target key end

     0   :  { %s3385_s0 = inlined_call_operand.hbm [shape: f32[4,8,128], index: 0, kind: input, shape index: {}]   ;;  %s3386_s1 = inlined_call_operand.hbm [shape: f32[4,128,128], index: 1, kind: input, shape index: {}]   ;;  %s3387_s2 = inlined_call_operand.hbm [shape: f32[4,128,128], index: 2, kind: input, shape index: {}]   ;;  %s3388_s3 = inlined_call_operand.hbm [shape: f32[128,128], index: 3, kind: input, shape index: {}]   ;;  %s3389_s4 = inlined_call_operand.hbm [shape: f32[128,128], index: 4, kind: input, shape index: {}]   ;;  %s3390_s5 = inlined_call_operand.hbm [shape: bf16[128,128], index: 5, kind: input, shape index: {}]   ;;  %s3391_s6 = inlined_call_operand.hbm [shape: bf16[128,128], index: 6, kind: input, shape index: {}]   ;;  %s3392_s7 = inlined_call_operand.hbm [shape: f32[4,8,128], index: 7, kind: output, shape index: {0}]   ;;  %s3393_s8 = inlined_call_operand.hbm [shape: f32[4,8,128], index: 8, kind: output, shape index: {1}]  }
   0x1   :  { %3422 = sst [smem:[#allocation29_spill]] %s3386_s1 }
   0x2   :  { %3423 = sst [smem:[#allocation30_spill]] %s3388_s3 }
   0x3   :  { %3424 = sst [smem:[#allocation31_spill]] %s3390_s5 }
   0x4   :  { %3425 = sst [smem:[#allocation32_spill]] %s3392_s7 }
   0x5   :  { %3426 = sst [smem:[#allocation33_spill]] %s3393_s8 }
   0x6   :  { %14 = vsyncpa [#allocation3], 0 }
   0x7   :  { %16 = vsyncpa [#allocation3 + $0x1], 0 }
   0x8   :  { %17 = vsyncpa [#allocation6], 0 }
   0x9   :  { %19 = vsyncpa [#allocation6 + $0x1], 0 }
   0xa   :  { %20 = vsyncpa [#allocation9], 0 }
   0xb   :  { %21 = vsyncpa [#allocation12], 0 }
   0xc   :  { %22 = vsyncpa [#allocation4], 0 }
   0xd   :  { %24 = vsyncpa [#allocation4 + $0x1], 0 }
   0xe   :  { %25 = vsyncpa [#allocation16], 0 }
   0xf   :  { %27 = vsyncpa [#allocation16 + $0x1], 0  ;;  %s2836_s27 = smov 0   ;;  %s2838_s28 = smov 0  }
  0x10   :  { %s2840_s29 = smov 0   ;;  %s2842_s30 = smov 0  }
  0x11 LB: > { %3427 = sst [smem:[#allocation23_spill]] %s2759_s27  ;;  %s2857_s9 = sadd.s32 4294967295, %s2771_s30   ;;  %s2771_s30 = sphi %s2842_s30, %s3468_s30   ;;  %s2767_s29 = sphi %s2840_s29, %s3470_s29   ;;  %s2763_s28 = sphi %s2838_s28, %s3472_s28   ;;  %s2759_s27 = sphi %s2836_s27, %s3471_s27  }
  0x12   : > { %3428 = sst [smem:[#allocation24_spill]] %s2767_s29  ;;  %s1709_s10 = sadd.s32 4294967294, %s2771_s30  }
  0x13   : > { %p53_p0 = scmp.ne.s32.totalorder %s2763_s28, %s2759_s27  ;;  %p3394_p1 = scmp.eq.s32.totalorder %s2857_s9, 0 }
  0x14   : > { %p219_p3 = scmp.eq.s32.totalorder %s1709_s10, 1  ;;  %p1710_p5 = scmp.ge.s32.totalorder %s2771_s30, 1 }
  0x15   : > { %p2866_p4 = por %p3394_p1, %p53_p0  ;;  %p252_p7 = scmp.lt.s32.totalorder %s2771_s30, 3 }
  0x16   : > { %p2871_p6 = por %p219_p3, %p53_p0  ;;  %s2773_s14 = smov [#allocation8]  }
  0x17   : > { %s3429_s11 = scalar_select %p2866_p4, 1, 0 }
  0x18   : > { %s3430_s12 = scalar_select %p2871_p6, 1, 0 }
  0x19   : > { %p2876_p8 = pnand %p1710_p5, %p252_p7  ;;  %s264_s15 = sshll.u32 %s2773_s14, 4  ;;  %s2880_s15 = int_to_ptr.vmem [resolvable:$true] %s264_s15 }
  0x1a   : > { %3431 = sst [smem:[#allocation25_spill]] %s3430_s12  ;;  %s2774_s17 = smov [#allocation11]  }
  0x1b   : > { %s3432_s13 = scalar_select %p2876_p8, 1, 0 }
  0x1c   : > { %p2350_p9 = pneg %p2876_p8  ;;  %s290_s18 = sshll.u32 %s2774_s17, 4  ;;  %s2891_s18 = int_to_ptr.vmem [resolvable:$true] %s290_s18 }
  0x1d   : > { %s3434_s3 = sld [smem:[#allocation30_spill]] }
  0x1e   : > { %p2887_p11 = pnand %p2350_p9, %p3394_p1 }
  0x20   : > { %s3433_s16 = scalar_select %p2887_p11, 1, 0 }
  0x21   : > { %p2901_p13 = pneg %p2887_p11 }
  0x23   : > { %s2459_s21 = scalar_lea.hbm %s3434_s3, 2048 }
  0x24   : > { %p2460_p12 = scmp.ne.s32.totalorder %s3434_s3, %s2459_s21  ;;  %p2466_p5 = scmp.lt.u32.totalorder %s2459_s21, %s3434_s3 }
  0x25   : > { %s3435_s24 = scalar_select %p2901_p13, 1, 0 }
  0x26   : > { %p2462_p0 = pnand %p2901_p13, %p2460_p12 }
  0x28   : > { %p2463_p3 = pneg %p2462_p0 }
  0x2a   : > { %p2468_p7 = pnand %p2466_p5, %p2463_p3 }
  0x2c   : > { %2471 = shalt.err (!%p2468_p7)
}
  0x2d   : > { %s2472_s10 = scalar_lea.vmem %s2880_s15, 2048  ;;  %p2480_p2 = scmp.lt.s32.totalorder %s2880_s15, %s2880_s15 }
  0x2e   : > { %p2473_p9 = scmp.ne.s32.totalorder %s2880_s15, %s2472_s10  ;;  %p2481_p6 = scmp.lt.s32.totalorder %s2472_s10, %s2472_s10 }
  0x30   : > { %p2475_p10 = pnand %p2473_p9, %p2901_p13  ;;  %p2482_p12 = por %p2481_p6, %p2480_p2 }
  0x32   : > { %p2476_p1 = pneg %p2475_p10 }
  0x34   : > { %p2483_p0 = pnand %p2482_p12, %p2476_p1 }
  0x36   : > { %2486 = shalt.err (!%p2483_p0)
}
  0x37   : > { %s3398_s14 = smov 128   ;;  %s3400_s17 = smov 8  }
  0x38   : > { %2353 = dma.hbm_to_vmem [thread:$0]  (!%p2887_p11), %s3434_s3, 2048, %s2880_s15, [#allocation9], %s3398_s14, %s3398_s14, %s3400_s17  }
  0x39   : > { %s3436_s5 = sld [smem:[#allocation31_spill]] }
  0x3f   : > { %s2487_s23 = scalar_lea.hbm %s3436_s5, 1024 }
  0x40   : > { %p2488_p1 = scmp.ne.s32.totalorder %s3436_s5, %s2487_s23  ;;  %p2494_p10 = scmp.lt.u32.totalorder %s2487_s23, %s3436_s5 }
  0x42   : > { %p2490_p2 = pnand %p2488_p1, %p2901_p13 }
  0x44   : > { %p2491_p6 = pneg %p2490_p2 }
  0x46   : > { %p2496_p3 = pnand %p2494_p10, %p2491_p6 }
  0x48   : > { %2499 = shalt.err (!%p2496_p3)
}
  0x49   : > { %s2500_s15 = scalar_lea.vmem %s2891_s18, 1024  ;;  %p2508_p12 = scmp.lt.s32.totalorder %s2891_s18, %s2891_s18 }
  0x4a   : > { %p2501_p5 = scmp.ne.s32.totalorder %s2891_s18, %s2500_s15  ;;  %p2509_p0 = scmp.lt.s32.totalorder %s2500_s15, %s2500_s15 }
  0x4c   : > { %p2503_p7 = pnand %p2501_p5, %p2901_p13  ;;  %p2510_p1 = por %p2509_p0, %p2508_p12 }
  0x4e   : > { %p2504_p9 = pneg %p2503_p7 }
  0x50   : > { %p2511_p2 = pnand %p2510_p1, %p2504_p9 }
  0x52   : > { %2514 = shalt.err (!%p2511_p2)
}
  0x53   : > { %s3396_s19 = smov 64   ;;  %s3397_s12 = smov 4  }
  0x54   : > { %2359 = dma.hbm_to_vmem [thread:$0]  (!%p2887_p11), %s3436_s5, 1024, %s2891_s18, [#allocation12], %s3396_s19, %s3396_s19, %s3397_s12  }
  0x55   : > { %s2952_s22 = sadd.s32 1, %s2771_s30   ;;  %s40_s25 = sadd.s32 1, %s2767_s29 }
  0x56   : > { %3437 = sst [smem:[#allocation26_spill]] %s2952_s22  ;;  %s37_s23 = ssub.s32 %s2771_s30, %s2952_s22 }
  0x57   : > { %p38_p6 = scmp.eq.s32.totalorder %s37_s23, 0  ;;  %p47_p10 = scmp.ne.s32.totalorder %s2767_s29, %s2763_s28 }
  0x58   : > { %p48_p3 = scmp.eq.s32.totalorder %s2771_s30, 0  ;;  %p3439_p7 = scmp.eq.s32.totalorder %s2857_s9, 1 }
  0x59   : > { %s2961_s26 = scalar_select %p38_p6, %s2767_s29, %s40_s25  }
  0x5a   : > { %p49_p5 = por %p48_p3, %p47_p10  ;;  %p2965_p9 = por %p3439_p7, %p47_p10 }
  0x5b   : > { %3438 = sst [smem:[#allocation27_spill]] %s2961_s26  ;;  %p2384_p12 = scmp.lt.s32.totalorder %s2771_s30, 2 }
  0x5c   : > { %s3440_s10 = scalar_select %p2965_p9, 1, 0 }
  0x5d   : > { %s2971_s15 = sand.u32 1, %s2767_s29   ;;  %s338_s18 = sand.u32 1, %s2771_s30  }
  0x5e   : > { %3441 = sst [smem:[#allocation28_spill]] %s3440_s10  ;;  %s3405_s20 = sshll.u32 %s2971_s15, 8 }
  0x5f   : > { %p2975_p0 = pnand %p2384_p12, %p49_p5  ;;  %s1763_s23 = sshll.u32 %s2771_s30, 12 }
  0x60   : > { %s3443_s1 = sld [smem:[#allocation29_spill]]  ;;  %s342_s14 = scalar_lea.vmem [#allocation5], %s3405_s20 }
  0x61   : > { %s3442_s21 = scalar_select %p2975_p0, 1, 0 }
  0x62   : > { %s350_s17 = sshll.u32 %s342_s14, 4  ;;  %s2992_s26 = scalar_lea.hbm %s3387_s2, %s1763_s23  ;;  %s2987_s17 = int_to_ptr.vmem [resolvable:$true] %s350_s17 }
  0x63   : > { %s2994_s29 = scalar_lea.sflag [#allocation6], %s338_s18  ;;  %p3000_p2 = pneg %p2975_p0 }
  0x65   : > { %s3444_s19 = scalar_select %p3000_p2, 1, 0 }
  0x66   : > { %s2983_s12 = scalar_lea.hbm %s3443_s1, %s1763_s23  ;;  %s2520_s20 = scalar_lea.hbm %s3443_s1, 8192 }
  0x67   : > { %s2515_s22 = scalar_lea.hbm %s2983_s12, 4096  ;;  %p2521_p3 = scmp.lt.u32.totalorder %s2983_s12, %s3443_s1 }
  0x68   : > { %p2516_p1 = scmp.ne.s32.totalorder %s2983_s12, %s2515_s22  ;;  %p2522_p5 = scmp.lt.u32.totalorder %s2520_s20, %s2515_s22 }
  0x69   : > { %p2524_p12 = scmp.lt.u32.totalorder %s2515_s22, %s2983_s12 }
  0x6a   : > { %p2518_p6 = pnand %p3000_p2, %p2516_p1  ;;  %p2523_p7 = por %p2522_p5, %p2521_p3 }
  0x6c   : > { %p2519_p10 = pneg %p2518_p6  ;;  %p2525_p9 = por %p2524_p12, %p2523_p7 }
  0x6e   : > { %p2526_p4 = pnand %p2525_p9, %p2519_p10 }
  0x70   : > { %2529 = shalt.err (!%p2526_p4)
}
  0x71   : > { %s2530_s18 = scalar_lea.vmem %s2987_s17, 4096  ;;  %s2779_s23 = smov [#allocation5]  }
  0x72   : > { %p2531_p1 = scmp.ne.s32.totalorder %s2987_s17, %s2530_s18  ;;  %s2535_s14 = sshll.u32 %s2779_s23, 4  ;;  %s2536_s14 = int_to_ptr.vmem [resolvable:$false] %s2535_s14 }
  0x73   : > { %s2537_s25 = scalar_lea.vmem %s2536_s14, 8192  ;;  %p2538_p11 = scmp.lt.s32.totalorder %s2987_s17, %s2536_s14 }
  0x74   : > { %p2533_p6 = pnand %p2531_p1, %p3000_p2  ;;  %p2539_p13 = scmp.lt.s32.totalorder %s2537_s25, %s2530_s18 }
  0x76   : > { %p2534_p8 = pneg %p2533_p6  ;;  %p2540_p3 = por %p2539_p13, %p2538_p11 }
  0x78   : > { %p2541_p5 = pnand %p2540_p3, %p2534_p8 }
  0x7a   : > { %2544 = shalt.err (!%p2541_p5)
}
  0x7b   : > { %s3445_s22 = smov 8   ;;  %s3446_s20 = smov 128  }
  0x7c   : > { %2369 = dma.hbm_to_vmem [thread:$0]  (!%p2975_p0), %s2983_s12, 4096, %s2987_s17, %s2994_s29, %s3446_s20, %s3446_s20, %s3445_s22  }
  0x7d   : > { %s3447_s3 = sshll.u32 %s2971_s15, 8  ;;  %s2780_s18 = smov [#allocation10]  }
  0x7e   : > { %s364_s5 = scalar_lea.vmem [#allocation7], %s3447_s3  ;;  %s277_s14 = sshll.u32 %s2780_s18, 4  ;;  %s278_s14 = int_to_ptr.vmem [resolvable:$true] %s277_s14 }
  0x7f   : > { %s372_s23 = sshll.u32 %s364_s5, 4  ;;  %s2545_s27 = scalar_lea.hbm %s3389_s4, 2048  ;;  %s3029_s23 = int_to_ptr.vmem [resolvable:$true] %s372_s23 }
  0x80   : > { %p2546_p4 = scmp.ne.s32.totalorder %s3389_s4, %s2545_s27  ;;  %p3448_p8 = scmp.ne.s32.totalorder %s3435_s24, 0 }
  0x81   : > { %p2552_p9 = scmp.lt.u32.totalorder %s2545_s27, %s3389_s4 }
  0x82   : > { %p2548_p11 = pnand %p2546_p4, %p3448_p8 }
  0x84   : > { %p2549_p13 = pneg %p2548_p11 }
  0x86   : > { %p2554_p10 = pnand %p2552_p9, %p2549_p13 }
  0x88   : > { %2557 = shalt.err (!%p2554_p10)
}
  0x89   : > { %s2558_s3 = scalar_lea.vmem %s278_s14, 2048  ;;  %p2566_p6 = scmp.lt.s32.totalorder %s278_s14, %s278_s14 }
  0x8a   : > { %p2559_p7 = scmp.ne.s32.totalorder %s278_s14, %s2558_s3  ;;  %p2567_p3 = scmp.lt.s32.totalorder %s2558_s3, %s2558_s3 }
  0x8c   : > { %p2561_p12 = pnand %p2559_p7, %p3448_p8  ;;  %p2568_p5 = por %p2567_p3, %p2566_p6 }
  0x8e   : > { %p2562_p1 = pneg %p2561_p12 }
  0x90   : > { %p2569_p0 = pnand %p2568_p5, %p2562_p1 }
  0x92   : > { %2572 = shalt.err (!%p2569_p0)
}
  0x93   : > { %p3449_p4 = scmp.ne.s32.totalorder %s3433_s16, 0  ;;  %s2781_s8 = smov [#allocation13]  }
  0x94   : > { %s303_s27 = sshll.u32 %s2781_s8, 4  ;;  %s1716_s5 = sshll.u32 %s2971_s15, 4  ;;  %s304_s27 = int_to_ptr.vmem [resolvable:$true] %s303_s27 }
  0x95   : > { %2356 = dma.hbm_to_vmem [thread:$0]  (!%p3449_p4), %s3389_s4, 2048, %s278_s14, [#allocation9], %s3446_s20, %s3446_s20, %s3445_s22  }
  0x96   : > { %s2573_s17 = scalar_lea.hbm %s3391_s6, 1024 }
  0x97   : > { %p2574_p0 = scmp.ne.s32.totalorder %s3391_s6, %s2573_s17  ;;  %p2580_p9 = scmp.lt.u32.totalorder %s2573_s17, %s3391_s6 }
  0x99   : > { %p2576_p11 = pnand %p2574_p0, %p3448_p8 }
  0x9b   : > { %p2577_p13 = pneg %p2576_p11 }
  0x9d   : > { %p2582_p10 = pnand %p2580_p9, %p2577_p13 }
  0x9f   : > { %2585 = shalt.err (!%p2582_p10)
}
  0xa0   : > { %s2586_s14 = scalar_lea.vmem %s304_s27, 1024  ;;  %p2594_p6 = scmp.lt.s32.totalorder %s304_s27, %s304_s27 }
  0xa1   : > { %p2587_p7 = scmp.ne.s32.totalorder %s304_s27, %s2586_s14  ;;  %p2595_p3 = scmp.lt.s32.totalorder %s2586_s14, %s2586_s14 }
  0xa3   : > { %p2589_p12 = pnand %p2587_p7, %p3448_p8  ;;  %p2596_p5 = por %p2595_p3, %p2594_p6 }
  0xa5   : > { %p2590_p1 = pneg %p2589_p12 }
  0xa7   : > { %p2597_p2 = pnand %p2596_p5, %p2590_p1 }
  0xa9   : > { %2600 = shalt.err (!%p2597_p2)
}
  0xaa   : > { %s3450_s7 = smov 4   ;;  %s3451_s8 = smov 64  }
  0xab   : > { %2362 = dma.hbm_to_vmem [thread:$0]  (!%p3449_p4), %s3391_s6, 1024, %s304_s27, [#allocation12], %s3451_s8, %s3451_s8, %s3450_s7  }
  0xac   : > { %s1761_s24 = sshll.u32 %s2771_s30, 8  ;;  %s321_s16 = scalar_lea.vmem [#allocation2], %s1716_s5 }
  0xad   : > { %s3078_s12 = scalar_lea.hbm %s3385_s0, %s1761_s24  ;;  %s328_s3 = sshll.u32 %s321_s16, 4  ;;  %s3080_s3 = int_to_ptr.vmem [resolvable:$true] %s328_s3 }
  0xae   : > { %s318_s1 = scalar_lea.sflag [#allocation3], %s2971_s15  ;;  %s2601_s14 = scalar_lea.hbm %s3078_s12, 256 }
  0xaf   : > { %p2602_p2 = scmp.ne.s32.totalorder %s3078_s12, %s2601_s14  ;;  %p3452_p8 = scmp.ne.s32.totalorder %s3444_s19, 0 }
  0xb0   : > { %s2606_s8 = scalar_lea.hbm %s3385_s0, 512  ;;  %p2607_p11 = scmp.lt.u32.totalorder %s3078_s12, %s3385_s0 }
  0xb1   : > { %p2604_p0 = pnand %p2602_p2, %p3452_p8  ;;  %p2608_p13 = scmp.lt.u32.totalorder %s2606_s8, %s2601_s14 }
  0xb2   : > { %p2610_p10 = scmp.lt.u32.totalorder %s2601_s14, %s3078_s12 }
  0xb3   : > { %p2605_p4 = pneg %p2604_p0  ;;  %p2609_p9 = por %p2608_p13, %p2607_p11 }
  0xb5   : > { %p2611_p7 = por %p2610_p10, %p2609_p9 }
  0xb7   : > { %p2612_p12 = pnand %p2611_p7, %p2605_p4 }
  0xb9   : > { %2615 = shalt.err (!%p2612_p12)
}
  0xba   : > { %s2616_s5 = scalar_lea.vmem %s3080_s3, 256  ;;  %s2782_s24 = smov [#allocation2]  }
  0xbb   : > { %p2617_p1 = scmp.ne.s32.totalorder %s3080_s3, %s2616_s5  ;;  %s2621_s25 = sshll.u32 %s2782_s24, 4  ;;  %s2622_s25 = int_to_ptr.vmem [resolvable:$false] %s2621_s25 }
  0xbc   : > { %s2623_s17 = scalar_lea.vmem %s2622_s25, 512  ;;  %p2624_p5 = scmp.lt.s32.totalorder %s3080_s3, %s2622_s25 }
  0xbd   : > { %p2619_p6 = pnand %p2617_p1, %p3452_p8  ;;  %p2625_p2 = scmp.lt.s32.totalorder %s2623_s17, %s2616_s5 }
  0xbf   : > { %p2620_p3 = pneg %p2619_p6  ;;  %p2626_p0 = por %p2625_p2, %p2624_p5 }
  0xc1   : > { %p2627_p11 = pnand %p2626_p0, %p2620_p3 }
  0xc3   : > { %2630 = shalt.err (!%p2627_p11)
}
  0xc4   : > { %p3453_p4 = scmp.ne.s32.totalorder %s3442_s21, 0  ;;  %s2631_s16 = scalar_lea.hbm %s2992_s26, 4096 }
  0xc5   : > { %p2632_p13 = scmp.ne.s32.totalorder %s2992_s26, %s2631_s16  ;;  %s2636_s7 = scalar_lea.hbm %s3387_s2, 8192 }
  0xc6   : > { %2366 = dma.hbm_to_vmem [thread:$0]  (!%p3453_p4), %s3078_s12, 256, %s3080_s3, %s318_s1, %s3446_s20, %s3446_s20, %s3445_s22  }
  0xc7   : > { %p2634_p9 = pnand %p2632_p13, %p3452_p8  ;;  %p2637_p7 = scmp.lt.u32.totalorder %s2992_s26, %s3387_s2 }
  0xc8   : > { %p2638_p12 = scmp.lt.u32.totalorder %s2636_s7, %s2631_s16  ;;  %p2640_p6 = scmp.lt.u32.totalorder %s2631_s16, %s2992_s26 }
  0xc9   : > { %p2635_p10 = pneg %p2634_p9 }
  0xca   : > { %p2639_p1 = por %p2638_p12, %p2637_p7 }
  0xcc   : > { %p2641_p3 = por %p2640_p6, %p2639_p1 }
  0xce   : > { %p2642_p5 = pnand %p2641_p3, %p2635_p10 }
  0xd0   : > { %2645 = shalt.err (!%p2642_p5)
}
  0xd1   : > { %s2646_s15 = scalar_lea.vmem %s3029_s23, 4096  ;;  %s2783_s12 = smov [#allocation7]  }
  0xd2   : > { %p2647_p2 = scmp.ne.s32.totalorder %s3029_s23, %s2646_s15  ;;  %s2651_s3 = sshll.u32 %s2783_s12, 4  ;;  %s2652_s3 = int_to_ptr.vmem [resolvable:$false] %s2651_s3 }
  0xd3   : > { %s2653_s1 = scalar_lea.vmem %s2652_s3, 8192  ;;  %p2654_p13 = scmp.lt.s32.totalorder %s3029_s23, %s2652_s3 }
  0xd4   : > { %p2649_p0 = pnand %p2647_p2, %p3452_p8  ;;  %p2655_p9 = scmp.lt.s32.totalorder %s2653_s1, %s2646_s15 }
  0xd6   : > { %p2650_p11 = pneg %p2649_p0  ;;  %p2656_p7 = por %p2655_p9, %p2654_p13 }
  0xd8   : > { %p2657_p12 = pnand %p2656_p7, %p2650_p11 }
  0xda   : > { %2660 = shalt.err (!%p2657_p12)
}
  0xdb   : > { %2372 = dma.hbm_to_vmem [thread:$0]  (!%p3453_p4), %s2992_s26, 4096, %s3029_s23, %s2994_s29, %s3446_s20, %s3446_s20, %s3445_s22  }
  0xdc   : > { %p3454_p8 = scmp.ne.s32.totalorder %s3432_s13, 0 }
  0xdd   : > { %s3137_s19 = sand.u32 (!%p3454_p8), 1, %s2763_s28   ;;  %p3455_p10 = scmp.ne.s32.totalorder (!%p3454_p8), %s3429_s11, 0 }
  0xde   : > { %384 = sbr.rel (%p3454_p8) target bundleno = 1554 (0x612), region = 48  ;;  %s3140_s18 = sshll.u32 (!%p3454_p8), %s3137_s19, 4 }
  0xdf   : > { %s387_s21 = scalar_lea.sflag (!%p3454_p8), [#allocation3], %s3137_s19  ;;  %s390_s5 = scalar_lea.vmem (!%p3454_p8), [#allocation2], %s3140_s18 }
  0xe5   : > { %2734 = dma.done.wait (%p3455_p10), %s387_s21, 256  }
  0xe6   : > { %2736 = vsyncadd (%p3455_p10), %s387_s21, 4294967040  ;;  %s395_s29 = sand.u32 1, %s2857_s9   ;;  %s1729_s13 = sshll.u32 %s3137_s19, 8 }
  0xe7   : > { %s396_s26 = scalar_lea.sflag [#allocation6], %s395_s29  ;;  %s3150_s22 = scalar_lea.vmem [#allocation5], %s1729_s13 }
  0xe8   : > { %2738 = dma.done.wait (%p3455_p10), %s396_s26, 8192  }
  0xe9   : > { %2740 = vsyncadd (%p3455_p10), %s396_s26, 4294959104  ;;  %s3156_s20 = scalar_lea.vmem [#allocation7], %s1729_s13  ;;  %p3456_p4 = scmp.eq.s32.totalorder %s2857_s9, 0 }
  0xeb   : > { %2742 = dma.done.wait (%p3456_p4), [#allocation9], 4096   ;;  %p3457_p1 = pmov %p3456_p4 }
  0xed   : > { %2744 = vsyncadd (%p3457_p1), [#allocation9], 4294963200  ;;  %p3458_p6 = pmov %p3457_p1 }
  0xee   : > { %p3459_p3 = pmov %p3457_p1 }
  0xef   : > { %2746 = dma.done.wait (%p3458_p6), [#allocation12], 2048  }
  0xf0   : > { %2748 = vsyncadd (%p3459_p3), [#allocation12], 4294965248  ;;  %v635_v0 = vld [vmem:[#allocation10] sm:$0xff]  ;;  %v636_v1 = vld [vmem:[#allocation10 + $0x8] sm:$0xff]  ;;  %vm2785_vm0 = vmmov 0   ;;  %s3279_s11 = scalar_lea.vmem [#allocation15], %s3140_s18 }
  0xf1   : > { %v637_v2 = vld [vmem:[#allocation10 + $0x10] sm:$0xff]  ;;  %v2244_v3 = vpack.c.bf16 %v636_v1, %v635_v0  ;;  %v638_v4 = vld [vmem:[#allocation10 + $0x18] sm:$0xff]  ;;  %v639_v6 = vld [vmem:[#allocation10 + $0x20] sm:$0xff]  ;;  %s3460_s23 = sld [smem:[#allocation28_spill]]  ;;  %s1766_s24 = sshll.u32 %s2857_s9, 8 }
  0xf2   : > { %v2248_v5 = vpack.c.bf16 %v638_v4, %v637_v2  ;;  %v640_v7 = vld [vmem:[#allocation10 + $0x28] sm:$0xff]  ;;  %v480_v9 = vld [vmem:[%s3150_s22] sm:$0xff]  ;;  %v641_v10 = vld [vmem:[#allocation10 + $0x30] sm:$0xff]  ;;  %s3461_s16 = sld [smem:[#allocation33_spill]]  ;;  %s1523_s27 = sshll.u32 %s3279_s11, 4  ;;  %s3301_s27 = int_to_ptr.vmem [resolvable:$true] %s1523_s27 }
  0xf3   : > { %2245 = vmatprep.subr.bf16.mxu1 %v2244_v3  ;;  %v2252_v8 = vpack.c.bf16 %v640_v7, %v639_v6  ;;  %v642_v11 = vld [vmem:[#allocation10 + $0x38] sm:$0xff]  ;;  %1986 = vmatprep.mubr.f32.mxu1 %v480_v9  ;;  %v643_v13 = vld [vmem:[#allocation10 + $0x40] sm:$0xff]  ;;  %v644_v14 = vld [vmem:[#allocation10 + $0x48] sm:$0xff]  ;;  %s1494_s7 = scalar_lea.sflag [#allocation16], %s3137_s19  ;;  %s2661_s8 = scalar_lea.vmem %s3301_s27, 256 }
  0xf4   : > { %2247 = vmatpush3.bf16.msra.mxu1 %v2244_v3  ;;  %v2256_v12 = vpack.c.bf16 %v642_v11, %v641_v10  ;;  %v544_v15 = vld [vmem:[#allocation8] sm:$0xff]  ;;  %v545_v16 = vld [vmem:[#allocation8 + $0x8] sm:$0xff]  ;;  %v546_v18 = vld [vmem:[#allocation8 + $0x10] sm:$0xff]  ;;  %v2260_v20 = vpack.c.bf16 %v644_v14, %v643_v13  ;;  %p2662_p5 = scmp.ne.s32.totalorder %s3301_s27, %s2661_s8  ;;  %s2787_s10 = smov [#allocation15]  }
  0xf5   : > { %2249 = vmatprep.subr.bf16.mxu1 %v2248_v5  ;;  %v2212_v17 = vpack.c.bf16 %v545_v16, %v544_v15  ;;  %v547_v19 = vld [vmem:[#allocation8 + $0x18] sm:$0xff]  ;;  %v548_v22 = vld [vmem:[#allocation8 + $0x20] sm:$0xff]  ;;  %v549_v23 = vld [vmem:[#allocation8 + $0x28] sm:$0xff]  ;;  %s2665_s15 = sshll.u32 %s2787_s10, 4  ;;  %s2666_s15 = int_to_ptr.vmem [resolvable:$false] %s2665_s15 }
  0xf6   : > { %v2216_v21 = vpack.c.bf16 %v547_v19, %v546_v18  ;;  %v645_v24 = vld [vmem:[#allocation10 + $0x50] sm:$0xff]  ;;  %v646_v25 = vld [vmem:[#allocation10 + $0x58] sm:$0xff]  ;;  %v2220_v26 = vpack.c.bf16 %v549_v23, %v548_v22  ;;  %v647_v30 = vld [vmem:[#allocation10 + $0x60] sm:$0xff]  ;;  %s2667_s12 = scalar_lea.vmem %s2666_s15, 512  ;;  %p2668_p13 = scmp.lt.s32.totalorder %s3301_s27, %s2666_s15 }
  0xf7   : > { %2213 = vmatprep.subr.bf16.mxu0 %v2212_v17  ;;  %v2264_v27 = vpack.c.bf16 %v646_v25, %v645_v24  ;;  %v550_v28 = vld [vmem:[#allocation8 + $0x30] sm:$0xff]  ;;  %v551_v29 = vld [vmem:[#allocation8 + $0x38] sm:$0xff]  ;;  %v648_v31 = vld [vmem:[#allocation10 + $0x68] sm:$0xff]  ;;  %p3462_p2 = scmp.ne.s32.totalorder %s3460_s23, 0  ;;  %p2669_p9 = scmp.lt.s32.totalorder %s2667_s12, %s2661_s8 }
  0xf8   : > { %2251 = vmatpush3.bf16.msra.mxu1 %v2248_v5  ;;  %2215 = vmatpush3.bf16.msra.mxu0 %v2212_v17  ;;  %v478_v32 = vld [vmem:[%s390_s5] sm:$0xff]  ;;  %v2224_v33 = vpack.c.bf16 %v551_v29, %v550_v28  ;;  %v2268_v34 = vpack.c.bf16 %v648_v31, %v647_v30  ;;  %v553_v37 = vld [vmem:[#allocation8 + $0x48] sm:$0xff]  ;;  %v650_v38 = vld [vmem:[#allocation10 + $0x78] sm:$0xff]  ;;  %s3298_s14 = scalar_lea.hbm %s3461_s16, %s1766_s24 }
  0xf9   : > { %2253 = vmatprep.subr.bf16.mxu1 %v2252_v8  ;;  %2217 = vmatprep.subr.bf16.mxu0 %v2216_v21  ;;  %v649_v35 = vld [vmem:[#allocation10 + $0x70] sm:$0xff]  ;;  %v552_v36 = vld [vmem:[#allocation8 + $0x40] sm:$0xff]  ;;  %v555_v40 = vld [vmem:[#allocation8 + $0x58] sm:$0xff]  ;;  %p2663_p0 = pnand %p2662_p5, %p3462_p2  ;;  %p2670_p7 = por %p2669_p9, %p2668_p13 }
  0xfa   : > { %1951 = vmatprep.mubr.f32.mxu0 %v478_v32  ;;  %v554_v39 = vld [vmem:[#allocation8 + $0x50] sm:$0xff]  ;;  %v2228_v41 = vpack.c.bf16 %v553_v37, %v552_v36  ;;  %v2272_v42 = vpack.c.bf16 %v650_v38, %v649_v35  ;;  %v556_v43 = vld [vmem:[#allocation8 + $0x60] sm:$0xff]  ;;  %v557_v44 = vld [vmem:[#allocation8 + $0x68] sm:$0xff] }
  0xfb   : > { %v2232_v45 = vpack.c.bf16 %v555_v40, %v554_v39  ;;  %v481_v46 = vld [vmem:[%s3150_s22 + $0x8] sm:$0xff]  ;;  %v2236_v47 = vpack.c.bf16 %v557_v44, %v556_v43  ;;  %v482_v48 = vld [vmem:[%s3150_s22 + $0x10] sm:$0xff]  ;;  %v559_v50 = vld [vmem:[#allocation8 + $0x78] sm:$0xff]  ;;  %p2664_p11 = pneg %p2663_p0 }
  0xfc   : > { %2255 = vmatpush3.bf16.msra.mxu1 %v2252_v8  ;;  %2219 = vmatpush3.bf16.msra.mxu0 %v2216_v21  ;;  %v558_v49 = vld [vmem:[#allocation8 + $0x70] sm:$0xff]  ;;  %v483_v51 = vld [vmem:[%s3150_s22 + $0x18] sm:$0xff]  ;;  %v484_v53 = vld [vmem:[%s3150_s22 + $0x20] sm:$0xff]  ;;  %v2784_v21 = vmov 0.0|0.0  }
  0xfd   : > { %2257 = vmatprep.subr.bf16.mxu1 %v2256_v12  ;;  %2221 = vmatprep.subr.bf16.mxu0 %v2220_v26  ;;  %v2240_v52 = vpack.c.bf16 %v559_v50, %v558_v49  ;;  %v485_v54 = vld [vmem:[%s3150_s22 + $0x28] sm:$0xff]  ;;  %v2435_v55 = vld [vmem:[#allocation11] sm:$0xff]   ;;  %v486_v56 = vld [vmem:[%s3150_s22 + $0x30] sm:$0xff]  ;;  %p2671_p12 = pnand %p2670_p7, %p2664_p11 }
  0xfe   : > { %v479_v57 = vld [vmem:[%s390_s5 + $0x8] sm:$0xff]  ;;  %v488_v59 = vld [vmem:[%s3150_s22 + $0x40] sm:$0xff]  ;;  %v490_v61 = vld [vmem:[%s3150_s22 + $0x50] sm:$0xff] }
  0xff   : > { %v487_v58 = vld [vmem:[%s3150_s22 + $0x38] sm:$0xff]  ;;  %v489_v60 = vld [vmem:[%s3150_s22 + $0x48] sm:$0xff]  ;;  %v492_v63 = vld [vmem:[%s3150_s22 + $0x60] sm:$0xff] }
 0x100   : > { %2259 = vmatpush3.bf16.msra.mxu1 %v2256_v12  ;;  %2223 = vmatpush3.bf16.msra.mxu0 %v2220_v26  ;;  %v491_v62 = vld [vmem:[%s3150_s22 + $0x58] sm:$0xff]  ;;  %v493_v0 = vld [vmem:[%s3150_s22 + $0x68] sm:$0xff]  ;;  %v494_v1 = vld [vmem:[%s3150_s22 + $0x70] sm:$0xff] }
 0x101   : > { %2261 = vmatprep.subr.bf16.mxu1 %v2260_v20  ;;  %2225 = vmatprep.subr.bf16.mxu0 %v2224_v33  ;;  %v495_v2 = vld [vmem:[%s3150_s22 + $0x78] sm:$0xff]  ;;  %v496_v3 = vld [vmem:[%s3150_s22 + $0x80] sm:$0xff]  ;;  %v497_v4 = vld [vmem:[%s3150_s22 + $0x88] sm:$0xff] }
 0x102   : > { %v498_v5 = vld [vmem:[%s3150_s22 + $0x90] sm:$0xff]  ;;  %v499_v6 = vld [vmem:[%s3150_s22 + $0x98] sm:$0xff]  ;;  %v500_v7 = vld [vmem:[%s3150_s22 + $0xa0] sm:$0xff] }
 0x103   : > { %v501_v8 = vld [vmem:[%s3150_s22 + $0xa8] sm:$0xff]  ;;  %v502_v9 = vld [vmem:[%s3150_s22 + $0xb0] sm:$0xff]  ;;  %v503_v10 = vld [vmem:[%s3150_s22 + $0xb8] sm:$0xff] }
 0x104   : > { %2263 = vmatpush3.bf16.msra.mxu1 %v2260_v20  ;;  %2227 = vmatpush3.bf16.msra.mxu0 %v2224_v33  ;;  %v504_v11 = vld [vmem:[%s3150_s22 + $0xc0] sm:$0xff]  ;;  %v505_v12 = vld [vmem:[%s3150_s22 + $0xc8] sm:$0xff]  ;;  %v506_v13 = vld [vmem:[%s3150_s22 + $0xd0] sm:$0xff] }
 0x105   : > { %2265 = vmatprep.subr.bf16.mxu1 %v2264_v27  ;;  %2229 = vmatprep.subr.bf16.mxu0 %v2228_v41  ;;  %v507_v14 = vld [vmem:[%s3150_s22 + $0xd8] sm:$0xff]  ;;  %v508_v15 = vld [vmem:[%s3150_s22 + $0xe0] sm:$0xff]  ;;  %v509_v16 = vld [vmem:[%s3150_s22 + $0xe8] sm:$0xff] }
 0x106   : > { %v510_v17 = vld [vmem:[%s3150_s22 + $0xf0] sm:$0xff]  ;;  %v511_v18 = vld [vmem:[%s3150_s22 + $0xf8] sm:$0xff]  ;;  %v2436_v19 = vld [vmem:[#allocation11 + $0x8] sm:$0xff]  }
 0x107   : > { %v2437_v20 = vld [vmem:[#allocation11 + $0x10] sm:$0xff]   ;;  %v2438_v22 = vld [vmem:[#allocation11 + $0x18] sm:$0xff]   ;;  %v2439_v23 = vld [vmem:[#allocation11 + $0x20] sm:$0xff]  }
 0x108   : > { %2267 = vmatpush3.bf16.msra.mxu1 %v2264_v27  ;;  %2231 = vmatpush3.bf16.msra.mxu0 %v2228_v41  ;;  %v2440_v24 = vld [vmem:[#allocation11 + $0x28] sm:$0xff]   ;;  %v2441_v25 = vld [vmem:[#allocation11 + $0x30] sm:$0xff]   ;;  %v2442_v26 = vld [vmem:[#allocation11 + $0x38] sm:$0xff]  }
 0x109   : > { %2269 = vmatprep.subr.bf16.mxu1 %v2268_v34  ;;  %2233 = vmatprep.subr.bf16.mxu0 %v2232_v45  ;;  %v512_v27 = vld [vmem:[%s3156_s20] sm:$0xff]  ;;  %v513_v28 = vld [vmem:[%s3156_s20 + $0x8] sm:$0xff]  ;;  %v514_v30 = vld [vmem:[%s3156_s20 + $0x10] sm:$0xff] }
 0x10a   : > { %v876_v29 = vpack.c.bf16 %v513_v28, %v512_v27  ;;  %v515_v31 = vld [vmem:[%s3156_s20 + $0x18] sm:$0xff]  ;;  %v516_v33 = vld [vmem:[%s3156_s20 + $0x20] sm:$0xff]  ;;  %v518_v36 = vld [vmem:[%s3156_s20 + $0x30] sm:$0xff] }
 0x10b   : > { %v877_v32 = vpack.c.bf16 %v515_v31, %v514_v30  ;;  %v519_v37 = vld [vmem:[%s3156_s20 + $0x38] sm:$0xff]  ;;  %v520_v39 = vld [vmem:[%s3156_s20 + $0x40] sm:$0xff]  ;;  %v521_v40 = vld [vmem:[%s3156_s20 + $0x48] sm:$0xff] }
 0x10c   : > { %2271 = vmatpush3.bf16.msra.mxu1 %v2268_v34  ;;  %2235 = vmatpush3.bf16.msra.mxu0 %v2232_v45  ;;  %v517_v34 = vld [vmem:[%s3156_s20 + $0x28] sm:$0xff]  ;;  %v879_v38 = vpack.c.bf16 %v519_v37, %v518_v36  ;;  %v880_v41 = vpack.c.bf16 %v521_v40, %v520_v39  ;;  %v523_v43 = vld [vmem:[%s3156_s20 + $0x58] sm:$0xff]  ;;  %v524_v45 = vld [vmem:[%s3156_s20 + $0x60] sm:$0xff] }
 0x10d   : > { %2273 = vmatprep.subr.bf16.mxu1 %v2272_v42  ;;  %2237 = vmatprep.subr.bf16.mxu0 %v2236_v47  ;;  %v878_v35 = vpack.c.bf16 %v517_v34, %v516_v33  ;;  %v527_v49 = vld [vmem:[%s3156_s20 + $0x78] sm:$0xff] }
 0x110   : > { %2275 = vmatpush3.bf16.msra.mxu1 %v2272_v42  ;;  %2239 = vmatpush3.bf16.msra.mxu0 %v2236_v47  ;;  %v522_v42 = vld [vmem:[%s3156_s20 + $0x50] sm:$0xff] }
 0x111   : > { %2241 = vmatprep.subr.bf16.mxu0 %v2240_v52  ;;  %2276 = vmatprep.subr.bf16.mxu1 %v2784_v21  ;;  %v881_v44 = vpack.c.bf16 %v523_v43, %v522_v42 }
 0x113   : > { %1987 = vmatmul.mubr.f32.vlgmr.msra.gmra.mrb[0].mxu1 %v481_v46  ;;  %v525_v46 = vld [vmem:[%s3156_s20 + $0x68] sm:$0xff] }
 0x114   : > { %1989 = vmatprep.mubr.f32.mxu1 %v482_v48  ;;  %2243 = vmatpush3.bf16.msra.mxu0 %v2240_v52  ;;  %v882_v47 = vpack.c.bf16 %v525_v46, %v524_v45  ;;  %v526_v48 = vld [vmem:[%s3156_s20 + $0x70] sm:$0xff]  ;;  %v529_v52 = vld [vmem:[%s3156_s20 + $0x88] sm:$0xff] }
 0x115   : > { %2034 = vmatprep.subr.bf16.mxu0 %v2435_v55  ;;  %v883_v50 = vpack.c.bf16 %v527_v49, %v526_v48 }
 0x117   : > { %1990 = vmatmul.mubr.f32.gmra.mrb[2].mxu1 %v483_v51  ;;  %1952 = vmatmul.mubr.f32.vlgmr.msra.gmra.mrb[0].mxu0 %v479_v57  ;;  %v528_v51 = vld [vmem:[%s3156_s20 + $0x80] sm:$0xff]  ;;  %v2786_v57 = vmov 0.0  }
 0x118   : > { %1992 = vmatprep.mubr.f32.mxu1 %v484_v53  ;;  %2035 = vmatpush3.bf16.msra.mxu0 %v2435_v55  ;;  %v884_v53 = vpack.c.bf16 %v529_v52, %v528_v51  ;;  %v531_v55 = vld [vmem:[%s3156_s20 + $0x98] sm:$0xff] }
 0x119   : > { %2036 = vmatprep.subr.bf16.mxu0 %v2436_v19  ;;  %2050 = vmatprep.mubr.bf16.mxu0 %v876_v29 }
 0x11b   : > { %1993 = vmatmul.mubr.f32.gmra.mrb[4].mxu1 %v485_v54  ;;  %v530_v54 = vld [vmem:[%s3156_s20 + $0x90] sm:$0xff] }
 0x11c   : > { %1995 = vmatprep.mubr.f32.mxu1 %v486_v56  ;;  %2037 = vmatpush3.bf16.msra.mxu0 %v2436_v19  ;;  %v885_v56 = vpack.c.bf16 %v531_v55, %v530_v54 }
 0x11d   : > { %2038 = vmatprep.subr.bf16.mxu0 %v2437_v20 }
 0x11f   : > { %1996 = vmatmul.mubr.f32.gmra.mrb[6].mxu1 %v487_v58  ;;  %v532_v58 = vld [vmem:[%s3156_s20 + $0xa0] sm:$0xff] }
 0x120   : > { %1998 = vmatprep.mubr.f32.mxu1 %v488_v59  ;;  %2039 = vmatpush3.bf16.msra.mxu0 %v2437_v20  ;;  %v533_v59 = vld [vmem:[%s3156_s20 + $0xa8] sm:$0xff] }
 0x121   : > { %2040 = vmatprep.subr.bf16.mxu0 %v2438_v22 }
 0x123   : > { %1999 = vmatmul.mubr.f32.gmra.mrb[8].mxu1 %v489_v60  ;;  %v886_v60 = vpack.c.bf16 %v533_v59, %v532_v58 }
 0x124   : > { %2001 = vmatprep.mubr.f32.mxu1 %v490_v61  ;;  %2041 = vmatpush3.bf16.msra.mxu0 %v2438_v22  ;;  %v534_v61 = vld [vmem:[%s3156_s20 + $0xb0] sm:$0xff] }
 0x125   : > { %2042 = vmatprep.subr.bf16.mxu0 %v2439_v23 }
 0x127   : > { %2002 = vmatmul.mubr.f32.gmra.mrb[10].mxu1 %v491_v62  ;;  %v535_v62 = vld [vmem:[%s3156_s20 + $0xb8] sm:$0xff] }
 0x128   : > { %2004 = vmatprep.mubr.f32.mxu1 %v492_v63  ;;  %2043 = vmatpush3.bf16.msra.mxu0 %v2439_v23  ;;  %v887_v63 = vpack.c.bf16 %v535_v62, %v534_v61 }
 0x129   : > { %2044 = vmatprep.subr.bf16.mxu0 %v2440_v24 }
 0x12b   : > { %2005 = vmatmul.mubr.f32.gmra.mrb[12].mxu1 %v493_v0  ;;  %v536_v0 = vld [vmem:[%s3156_s20 + $0xc0] sm:$0xff] }
 0x12c   : > { %2007 = vmatprep.mubr.f32.mxu1 %v494_v1  ;;  %2045 = vmatpush3.bf16.msra.mxu0 %v2440_v24  ;;  %v537_v1 = vld [vmem:[%s3156_s20 + $0xc8] sm:$0xff] }
 0x12d   : > { %2046 = vmatprep.subr.bf16.mxu0 %v2441_v25 }
 0x12f   : > { %2008 = vmatmul.mubr.f32.gmra.mrb[14].mxu1 %v495_v2  ;;  %v888_v2 = vpack.c.bf16 %v537_v1, %v536_v0 }
 0x130   : > { %2010 = vmatprep.mubr.f32.mxu1 %v496_v3  ;;  %2047 = vmatpush3.bf16.msra.mxu0 %v2441_v25  ;;  %v538_v3 = vld [vmem:[%s3156_s20 + $0xd0] sm:$0xff] }
 0x131   : > { %2048 = vmatprep.subr.bf16.mxu0 %v2442_v26 }
 0x133   : > { %2011 = vmatmul.mubr.f32.gmra.mrb[16].mxu1 %v497_v4  ;;  %v539_v4 = vld [vmem:[%s3156_s20 + $0xd8] sm:$0xff] }
 0x134   : > { %2013 = vmatprep.mubr.f32.mxu1 %v498_v5  ;;  %2049 = vmatpush3.bf16.msra.mxu0 %v2442_v26  ;;  %v889_v5 = vpack.c.bf16 %v539_v4, %v538_v3 }
 0x135   : > { %2300 = vmatprep.subr.bf16.mxu0 %v2784_v21 }
 0x137   : > { %2014 = vmatmul.mubr.f32.gmra.mrb[18].mxu1 %v499_v6  ;;  %2051 = vmatmul.mubr.bf16.vlgmr.msra.gmra.mrb[4].mxu0 %v877_v32  ;;  %v540_v6 = vld [vmem:[%s3156_s20 + $0xe0] sm:$0xff] }
 0x138   : > { %2016 = vmatprep.mubr.f32.mxu1 %v500_v7  ;;  %2054 = vmatprep.mubr.bf16.mxu0 %v878_v35  ;;  %v541_v7 = vld [vmem:[%s3156_s20 + $0xe8] sm:$0xff] }
 0x13b   : > { %2017 = vmatmul.mubr.f32.gmra.mrb[20].mxu1 %v501_v8  ;;  %v890_v8 = vpack.c.bf16 %v541_v7, %v540_v6 }
 0x13c   : > { %2019 = vmatprep.mubr.f32.mxu1 %v502_v9  ;;  %v542_v9 = vld [vmem:[%s3156_s20 + $0xf0] sm:$0xff] }
 0x13f   : > { %2020 = vmatmul.mubr.f32.gmra.mrb[22].mxu1 %v503_v10  ;;  %2055 = vmatmul.mubr.bf16.gmra.mrb[8].mxu0 %v879_v38  ;;  %v543_v10 = vld [vmem:[%s3156_s20 + $0xf8] sm:$0xff] }
 0x140   : > { %2022 = vmatprep.mubr.f32.mxu1 %v504_v11  ;;  %2058 = vmatprep.mubr.bf16.mxu0 %v880_v41  ;;  %v891_v11 = vpack.c.bf16 %v543_v10, %v542_v9 }
 0x143   : > { %2023 = vmatmul.mubr.f32.gmra.mrb[24].mxu1 %v505_v12 }
 0x144   : > { %2025 = vmatprep.mubr.f32.mxu1 %v506_v13 }
 0x147   : > { %2026 = vmatmul.mubr.f32.gmra.mrb[26].mxu1 %v507_v14  ;;  %2059 = vmatmul.mubr.bf16.gmra.mrb[12].mxu0 %v881_v44 }
 0x148   : > { %2028 = vmatprep.mubr.f32.mxu1 %v508_v15  ;;  %2062 = vmatprep.mubr.bf16.mxu0 %v882_v47 }
 0x14b   : > { %2029 = vmatmul.mubr.f32.gmra.mrb[28].mxu1 %v509_v16 }
 0x14c   : > { %2031 = vmatprep.mubr.f32.mxu1 %v510_v17 }
 0x14f   : > { %2032 = vmatmul.mubr.f32.gmra.mrb[30].mxu1 %v511_v18  ;;  %2063 = vmatmul.mubr.bf16.gmra.mrb[16].mxu0 %v883_v50 }
 0x150   : > { %2066 = vmatprep.mubr.bf16.mxu0 %v884_v53  ;;  %2114 = vmatprep.mubr.msk.f32.mxu1 %vm2785_vm0, %v2786_v57 }
 0x157   : > { %2067 = vmatmul.mubr.bf16.gmra.mrb[20].mxu0 %v885_v56 }
 0x158   : > { %2070 = vmatprep.mubr.bf16.mxu0 %v886_v60 }
 0x15f   : > { %2071 = vmatmul.mubr.bf16.gmra.mrb[24].mxu0 %v887_v63 }
 0x160   : > { %2074 = vmatprep.mubr.bf16.mxu0 %v888_v2 }
 0x167   : > { %2075 = vmatmul.mubr.bf16.gmra.mrb[28].mxu0 %v889_v5 }
 0x168   : > { %2078 = vmatprep.mubr.bf16.mxu0 %v890_v8 }
 0x16f   : > { %2079 = vmatmul.mubr.bf16.gmra.mrb[32].mxu0 %v891_v11 }
 0x170   : > { %2149 = vmatprep.mubr.msk.f32.mxu0 %vm2785_vm0, %v2786_v57 }
 0x1e6   : > { %v1988_v12 = vpop.f32.mrb[0].mxu1 }
 0x1e7   : > { %v717_v13 = vpop.f32.mrb[1].mxu1 }
 0x1e8   : > { %v2277_v14 = vpack.c.bf16 %v1988_v12, %v717_v13 }
 0x1ea   : > { %v1991_v15 = vpop.f32.mrb[2].mxu1  ;;  %2278 = vmatpush3.bf16.xpose.msra.mxu1 %v2277_v14  ;;  %v3241_v22 = vpop.f32.mrb[0].mxu0 }
 0x1eb   : > { %v727_v16 = vpop.f32.mrb[3].mxu1  ;;  %2279 = vmatprep.subr.bf16.mxu1 %v2784_v21  ;;  %v626_v24 = vpop.f32.mrb[1].mxu0 }
 0x1ec   : > { %v2280_v17 = vpack.c.bf16 %v1991_v15, %v727_v16 }
 0x1ee   : > { %v1994_v18 = vpop.f32.mrb[4].mxu1 }
 0x1ef   : > { %v737_v19 = vpop.f32.mrb[5].mxu1 }
 0x1f0   : > { %v2283_v20 = vpack.c.bf16 %v1994_v18, %v737_v19 }
 0x1f2   : > { %v1997_v23 = vpop.f32.mrb[6].mxu1  ;;  %2281 = vmatpush3.bf16.xpose.msra.mxu1 %v2280_v17 }
 0x1f3   : > { %v747_v25 = vpop.f32.mrb[7].mxu1  ;;  %2282 = vmatprep.subr.bf16.mxu1 %v2784_v21 }
 0x1f4   : > { %v2286_v26 = vpack.c.bf16 %v1997_v23, %v747_v25 }
 0x1f6   : > { %v2000_v27 = vpop.f32.mrb[8].mxu1 }
 0x1f7   : > { %v757_v28 = vpop.f32.mrb[9].mxu1 }
 0x1f8   : > { %v2289_v29 = vpack.c.bf16 %v2000_v27, %v757_v28 }
 0x1fa   : > { %v2003_v30 = vpop.f32.mrb[10].mxu1  ;;  %2284 = vmatpush3.bf16.xpose.msra.mxu1 %v2283_v20 }
 0x1fb   : > { %v767_v31 = vpop.f32.mrb[11].mxu1  ;;  %2285 = vmatprep.subr.bf16.mxu1 %v2784_v21 }
 0x1fc   : > { %v2292_v32 = vpack.c.bf16 %v2003_v30, %v767_v31 }
 0x1fe   : > { %v2006_v33 = vpop.f32.mrb[12].mxu1 }
 0x1ff   : > { %v777_v34 = vpop.f32.mrb[13].mxu1 }
 0x200   : > { %v2295_v35 = vpack.c.bf16 %v2006_v33, %v777_v34 }
 0x202   : > { %v2009_v36 = vpop.f32.mrb[14].mxu1  ;;  %2287 = vmatpush3.bf16.xpose.msra.mxu1 %v2286_v26 }
 0x203   : > { %v787_v37 = vpop.f32.mrb[15].mxu1  ;;  %2288 = vmatprep.subr.bf16.mxu1 %v2784_v21 }
 0x204   : > { %v2298_v38 = vpack.c.bf16 %v2009_v36, %v787_v37 }
 0x206   : > { %v2012_v39 = vpop.f32.mrb[16].mxu1 }
 0x207   : > { %v797_v40 = vpop.f32.mrb[17].mxu1 }
 0x208   : > { %v2301_v41 = vpack.c.bf16 %v2012_v39, %v797_v40 }
 0x20a   : > { %2290 = vmatpush3.bf16.xpose.msra.mxu1 %v2289_v29  ;;  %2302 = vmatpush3.bf16.xpose.msra.mxu0 %v2301_v41  ;;  %v2015_v42 = vpop.f32.mrb[18].mxu1  ;;  %v2052_v0 = vpop.f32.mrb[4].mxu0 }
 0x20b   : > { %v807_v43 = vpop.f32.mrb[19].mxu1  ;;  %2291 = vmatprep.subr.bf16.mxu1 %v2784_v21  ;;  %2303 = vmatprep.subr.bf16.mxu0 %v2784_v21  ;;  %v990_v1 = vpop.f32.mrb[5].mxu0 }
 0x20c   : > { %v2304_v44 = vpack.c.bf16 %v2015_v42, %v807_v43  ;;  %v2053_v2 = vpop.f32.mrb[6].mxu0 }
 0x20d   : > { %v1283_v3 = vpack.c.bf16 %v2053_v2, %v2052_v0  ;;  %v993_v4 = vpop.f32.mrb[7].mxu0 }
 0x20e   : > { %v2018_v45 = vpop.f32.mrb[20].mxu1  ;;  %v1282_v5 = vpack.c.bf16 %v993_v4, %v990_v1 }
 0x20f   : > { %v817_v46 = vpop.f32.mrb[21].mxu1 }
 0x210   : > { %v2307_v47 = vpack.c.bf16 %v2018_v45, %v817_v46 }
 0x212   : > { %2293 = vmatpush3.bf16.xpose.msra.mxu1 %v2292_v32  ;;  %2305 = vmatpush3.bf16.xpose.msra.mxu0 %v2304_v44  ;;  %v2021_v48 = vpop.f32.mrb[22].mxu1  ;;  %v2056_v6 = vpop.f32.mrb[8].mxu0 }
 0x213   : > { %2294 = vmatprep.subr.bf16.mxu1 %v2784_v21  ;;  %2306 = vmatprep.subr.bf16.mxu0 %v2784_v21  ;;  %v827_v49 = vpop.f32.mrb[23].mxu1  ;;  %v1006_v7 = vpop.f32.mrb[9].mxu0 }
 0x214   : > { %v2310_v50 = vpack.c.bf16 %v2021_v48, %v827_v49  ;;  %v1257_v48 = vlaneseq }
 0x216   : > { %v2024_v51 = vpop.f32.mrb[24].mxu1  ;;  %v1258_v49 = vand.u32 127, %v1257_v48 }
 0x217   : > { %v837_v52 = vpop.f32.mrb[25].mxu1 }
 0x218   : > { %v2313_v53 = vpack.c.bf16 %v2024_v51, %v837_v52  ;;  %vm1259_vm1 = vcmp.lt.s32.totalorder %v1258_v49, 8 }
 0x21a   : > { %2296 = vmatpush3.bf16.xpose.msra.mxu1 %v2295_v35  ;;  %2308 = vmatpush3.bf16.xpose.msra.mxu0 %v2307_v47  ;;  %v2027_v54 = vpop.f32.mrb[26].mxu1 }
 0x21b   : > { %2297 = vmatprep.subr.bf16.mxu1 %v2784_v21  ;;  %2309 = vmatprep.subr.bf16.mxu0 %v2784_v21  ;;  %v847_v55 = vpop.f32.mrb[27].mxu1 }
 0x21c   : > { %v2316_v56 = vpack.c.bf16 %v2027_v54, %v847_v55 }
 0x21e   : > { %v2030_v58 = vpop.f32.mrb[28].mxu1 }
 0x21f   : > { %v857_v59 = vpop.f32.mrb[29].mxu1 }
 0x220   : > { %v2319_v60 = vpack.c.bf16 %v2030_v58, %v857_v59 }
 0x222   : > { %2299 = vmatpush3.bf16.xpose.msra.mxu1 %v2298_v38  ;;  %2311 = vmatpush3.bf16.xpose.msra.mxu0 %v2310_v50  ;;  %v2033_v61 = vpop.f32.mrb[30].mxu1 }
 0x223   : > { %2312 = vmatprep.subr.bf16.mxu0 %v2784_v21  ;;  %v867_v62 = vpop.f32.mrb[31].mxu1  ;;  %2152 = vmatprep.subr.bf16.mxu1 %v2786_v57 }
 0x224   : > { %v2322_v63 = vpack.c.bf16 %v2033_v61, %v867_v62 }
 0x229   : > { %2115 = vmatmul.mubr.f32.vlgmr.msra.gmra.mrb[32].mxu1 %v626_v24 }
 0x22a   : > { %2314 = vmatpush3.bf16.xpose.msra.mxu0 %v2313_v53  ;;  %2168 = vmatprep.mubr.msk.bf16.mxu1 %vm2785_vm0, %v2786_v57 }
 0x22b   : > { %2315 = vmatprep.subr.bf16.mxu0 %v2784_v21  ;;  %2153 = vmatpush3.bf16.msra.mxu1 %v1282_v5 }
 0x22c   : > { %2154 = vmatprep.subr.bf16.mxu1 %v2786_v57 }
 0x22f   : > { %2155 = vmatpush3.bf16.msra.mxu1 %v1283_v3 }
 0x230   : > { %2156 = vmatprep.subr.bf16.mxu1 %v2786_v57 }
 0x232   : > { %2317 = vmatpush3.bf16.xpose.msra.mxu0 %v2316_v56 }
 0x233   : > { %2318 = vmatprep.subr.bf16.mxu0 %v2784_v21 }
 0x23a   : > { %2320 = vmatpush3.bf16.xpose.msra.mxu0 %v2319_v60 }
 0x23b   : > { %2321 = vmatprep.subr.bf16.mxu0 %v2784_v21  ;;  %v2057_v21 = vpop.f32.mrb[10].mxu0 }
 0x23c   : > { %v1285_v8 = vpack.c.bf16 %v2057_v21, %v2056_v6  ;;  %v1009_v9 = vpop.f32.mrb[11].mxu0 }
 0x23d   : > { %v1284_v10 = vpack.c.bf16 %v1009_v9, %v1006_v7  ;;  %v2060_v11 = vpop.f32.mrb[12].mxu0  ;;  %v2444_v9 = vld [vmem:[#allocation13 + $0x8] sm:$0xff]  }
 0x23e   : > { %v1022_v12 = vpop.f32.mrb[13].mxu0 }
 0x23f   : > { %2157 = vmatpush3.bf16.msra.mxu1 %v1284_v10  ;;  %v2061_v13 = vpop.f32.mrb[14].mxu0  ;;  %v2445_v10 = vld [vmem:[#allocation13 + $0x10] sm:$0xff]  }
 0x240   : > { %2158 = vmatprep.subr.bf16.mxu1 %v2786_v57  ;;  %v1287_v14 = vpack.c.bf16 %v2061_v13, %v2060_v11  ;;  %v1025_v15 = vpop.f32.mrb[15].mxu0  ;;  %v2446_v11 = vld [vmem:[#allocation13 + $0x18] sm:$0xff]   ;;  %v2448_v13 = vld [vmem:[#allocation13 + $0x28] sm:$0xff]  }
 0x241   : > { %v1286_v16 = vpack.c.bf16 %v1025_v15, %v1022_v12  ;;  %v2064_v17 = vpop.f32.mrb[16].mxu0  ;;  %v2447_v12 = vld [vmem:[#allocation13 + $0x20] sm:$0xff]   ;;  %v2450_v15 = vld [vmem:[#allocation13 + $0x38] sm:$0xff]  }
 0x242   : > { %2323 = vmatpush3.bf16.xpose.msra.mxu0 %v2322_v63  ;;  %v1038_v18 = vpop.f32.mrb[17].mxu0 }
 0x243   : > { %2172 = vmatprep.subr.bf16.mxu0 %v2786_v57  ;;  %2159 = vmatpush3.bf16.msra.mxu1 %v1285_v8  ;;  %v2065_v19 = vpop.f32.mrb[18].mxu0  ;;  %v2443_v8 = vld [vmem:[#allocation13] sm:$0xff]  }
 0x244   : > { %2160 = vmatprep.subr.bf16.mxu1 %v2786_v57  ;;  %v1289_v20 = vpack.c.bf16 %v2065_v19, %v2064_v17 }
 0x247   : > { %2161 = vmatpush3.bf16.msra.mxu1 %v1286_v16 }
 0x248   : > { %2162 = vmatprep.subr.bf16.mxu1 %v2786_v57 }
 0x249   : > { %2150 = vmatmul.mubr.f32.vlgmr.msra.gmra.mrb[2].mxu0 %v3241_v22  ;;  %v1041_v22 = vpop.f32.mrb[19].mxu0 }
 0x24a   : > { %2188 = vmatprep.mubr.msk.bf16.mxu0 %vm2785_vm0, %v2786_v57  ;;  %v1288_v23 = vpack.c.bf16 %v1041_v22, %v1038_v18  ;;  %v2068_v24 = vpop.f32.mrb[20].mxu0 }
 0x24b   : > { %2163 = vmatpush3.bf16.msra.mxu1 %v1287_v14  ;;  %v1054_v25 = vpop.f32.mrb[21].mxu0  ;;  %v2449_v14 = vld [vmem:[#allocation13 + $0x30] sm:$0xff]  }
 0x24c   : > { %2164 = vmatprep.subr.bf16.mxu1 %v2786_v57  ;;  %v2069_v26 = vpop.f32.mrb[22].mxu0 }
 0x24d   : > { %v1291_v27 = vpack.c.bf16 %v2069_v26, %v2068_v24  ;;  %v1057_v28 = vpop.f32.mrb[23].mxu0 }
 0x24e   : > { %v1290_v29 = vpack.c.bf16 %v1057_v28, %v1054_v25  ;;  %v2072_v30 = vpop.f32.mrb[24].mxu0 }
 0x24f   : > { %2165 = vmatpush3.bf16.msra.mxu1 %v1288_v23  ;;  %v1070_v31 = vpop.f32.mrb[25].mxu0 }
 0x250   : > { %2166 = vmatprep.subr.bf16.mxu1 %v2786_v57  ;;  %2173 = vmatpush3.bf16.msra.mxu0 %v1290_v29  ;;  %v2073_v32 = vpop.f32.mrb[26].mxu0 }
 0x251   : > { %2174 = vmatprep.subr.bf16.mxu0 %v2786_v57  ;;  %v1293_v33 = vpack.c.bf16 %v2073_v32, %v2072_v30  ;;  %v1073_v34 = vpop.f32.mrb[27].mxu0 }
 0x252   : > { %v1292_v35 = vpack.c.bf16 %v1073_v34, %v1070_v31  ;;  %v2076_v36 = vpop.f32.mrb[28].mxu0 }
 0x253   : > { %2167 = vmatpush3.bf16.msra.mxu1 %v1289_v20  ;;  %v1086_v37 = vpop.f32.mrb[29].mxu0 }
 0x254   : > { %2192 = vmatprep.subr.bf16.mxu1 %v2786_v57  ;;  %2175 = vmatpush3.bf16.msra.mxu0 %v1291_v27  ;;  %v2077_v38 = vpop.f32.mrb[30].mxu0 }
 0x255   : > { %2176 = vmatprep.subr.bf16.mxu0 %v2786_v57  ;;  %v1295_v39 = vpack.c.bf16 %v2077_v38, %v2076_v36  ;;  %v1089_v40 = vpop.f32.mrb[31].mxu0 }
 0x256   : > { %v1294_v41 = vpack.c.bf16 %v1089_v40, %v1086_v37  ;;  %v2080_v42 = vpop.f32.mrb[32].mxu0 }
 0x257   : > { %v1102_v43 = vpop.f32.mrb[33].mxu0 }
 0x258   : > { %2177 = vmatpush3.bf16.msra.mxu0 %v1292_v35  ;;  %v2081_v44 = vpop.f32.mrb[34].mxu0 }
 0x259   : > { %2178 = vmatprep.subr.bf16.mxu0 %v2786_v57  ;;  %v1297_v45 = vpack.c.bf16 %v2081_v44, %v2080_v42  ;;  %v1105_v46 = vpop.f32.mrb[35].mxu0 }
 0x25a   : > { %v1296_v47 = vpack.c.bf16 %v1105_v46, %v1102_v43 }
 0x25c   : > { %2179 = vmatpush3.bf16.msra.mxu0 %v1293_v33 }
 0x25d   : > { %2180 = vmatprep.subr.bf16.mxu0 %v2786_v57 }
 0x260   : > { %2181 = vmatpush3.bf16.msra.mxu0 %v1294_v41 }
 0x261   : > { %2182 = vmatprep.subr.bf16.mxu0 %v2786_v57 }
 0x264   : > { %2183 = vmatpush3.bf16.msra.mxu0 %v1295_v39 }
 0x265   : > { %2184 = vmatprep.subr.bf16.mxu0 %v2786_v57 }
 0x268   : > { %2185 = vmatpush3.bf16.msra.mxu0 %v1296_v47 }
 0x269   : > { %2186 = vmatprep.subr.bf16.mxu0 %v2786_v57 }
 0x26c   : > { %2187 = vmatpush3.bf16.msra.mxu0 %v1297_v45 }
 0x2fc   : > { %v1183_v50 = vpop.f32.mrb[32].mxu1 }
 0x2fd   : > { %v1260_v51 = vsel %vm1259_vm1, %v1183_v50, -inf  ;;  %v2116_v52 = vpop.f32.mrb[33].mxu1 }
 0x2fe   : > { %1262 = vmax.xlane.f32.xlu0 %v1260_v51 }
 0x31c   : > { %v1253_v53 = vpop.f32.mrb[2].mxu0 }
 0x31d   : > { %v2151_v54 = vpop.f32.mrb[3].mxu0  ;;  %v1261_v55 = vsel %vm1259_vm1, %v1253_v53, -inf }
 0x31e   : > { %1264 = vmax.xlane.f32.xlu0 %v1261_v55 }
 0x38b   : > { %v1263_v56 = vpop.xlane.xlu0 %1262 }
 0x38c   : > { %v1266_v58 = vsub.f32 %v1260_v51, %v1263_v56 }
 0x38e   : > { %v1268_v59 = vmul.f32 1.442695, %v1266_v58 }
 0x390   : > { %2451 = vpow2.f32 %v1268_v59 }
 0x39a   : > { %v2452_v60 = vpop.eup %2451 }
 0x39b   : > { %1272 = vadd.xlane.f32.xlu1 %v2452_v60 }
 0x3ab   : > { %v1265_v61 = vpop.xlane.xlu0 %1264 }
 0x3ac   : > { %v1267_v62 = vsub.f32 %v1261_v55, %v1265_v61 }
 0x3ae   : > { %v1270_v63 = vmul.f32 1.442695, %v1267_v62 }
 0x3b0   : > { %2453 = vpow2.f32 %v1270_v63 }
 0x3ba   : > { %v2454_v0 = vpop.eup %2453 }
 0x3bb   : > { %1274 = vadd.xlane.f32.xlu1 %v2454_v0 }
 0x428   : > { %v1273_v1 = vpop.xlane.xlu1 %1272 }
 0x429   : > { %2455 = vrcp.f32 %v1273_v1 }
 0x433   : > { %v2456_v2 = vpop.eup %2455 }
 0x434   : > { %v1278_v3 = vmul.f32 %v2456_v2, %v2452_v60 }
 0x436   : > { %v1280_v4 = vpack.c.bf16 %v1278_v3, %v1278_v3  ;;  %1486 = vst [vmem:[%s3279_s11] sm:$0xff] %v1278_v3 }
 0x438   : > { %2169 = vmatmul.mubr.bf16.vlgmr.msra.gmra.mrb[36].mxu1 %v1280_v4 }
 0x439   : > { %2208 = vmatprep.mubr.msk.bf16.mxu1 %vm2785_vm0, %v2786_v57  ;;  %2193 = vmatpush3.bf16.msra.mxu1 %v2443_v8 }
 0x43a   : > { %2194 = vmatprep.subr.bf16.mxu1 %v2786_v57 }
 0x43d   : > { %2195 = vmatpush3.bf16.msra.mxu1 %v2444_v9 }
 0x43e   : > { %2196 = vmatprep.subr.bf16.mxu1 %v2786_v57 }
 0x441   : > { %2197 = vmatpush3.bf16.msra.mxu1 %v2445_v10 }
 0x442   : > { %2198 = vmatprep.subr.bf16.mxu1 %v2786_v57 }
 0x445   : > { %2199 = vmatpush3.bf16.msra.mxu1 %v2446_v11 }
 0x446   : > { %2200 = vmatprep.subr.bf16.mxu1 %v2786_v57 }
 0x448   : > { %v1275_v5 = vpop.xlane.xlu1 %1274 }
 0x449   : > { %2457 = vrcp.f32 %v1275_v5  ;;  %2201 = vmatpush3.bf16.msra.mxu1 %v2447_v12 }
 0x44a   : > { %2202 = vmatprep.subr.bf16.mxu1 %v2786_v57 }
 0x44d   : > { %2203 = vmatpush3.bf16.msra.mxu1 %v2448_v13 }
 0x44e   : > { %2204 = vmatprep.subr.bf16.mxu1 %v2786_v57 }
 0x451   : > { %2205 = vmatpush3.bf16.msra.mxu1 %v2449_v14 }
 0x452   : > { %2206 = vmatprep.subr.bf16.mxu1 %v2786_v57 }
 0x453   : > { %v2458_v6 = vpop.eup %2457 }
 0x454   : > { %v1279_v7 = vmul.f32 %v2458_v6, %v2454_v0 }
 0x455   : > { %2207 = vmatpush3.bf16.msra.mxu1 %v2450_v15 }
 0x456   : > { %v1281_v21 = vpack.c.bf16 %v1279_v7, %v1279_v7  ;;  %1487 = vst [vmem:[%s3279_s11 + $0x8] sm:$0xff] %v1279_v7 }
 0x458   : > { %2189 = vmatmul.mubr.bf16.vlgmr.msra.gmra.mrb[36].mxu0 %v1281_v21 }
 0x50b   : > { %v1332_v16 = vpop.f32.mrb[36].mxu1 }
 0x50c   : > { %v2170_v17 = vpop.f32.mrb[37].mxu1 }
 0x50d   : > { %v1335_v18 = vpop.f32.mrb[38].mxu1 }
 0x50e   : > { %v2171_v19 = vpop.f32.mrb[39].mxu1 }
 0x52b   : > { %v1372_v20 = vpop.f32.mrb[36].mxu0 }
 0x52c   : > { %v1378_v22 = vpack.c.bf16 %v1372_v20, %v1332_v16  ;;  %v2190_v23 = vpop.f32.mrb[37].mxu0 }
 0x52d   : > { %v1375_v24 = vpop.f32.mrb[38].mxu0 }
 0x52e   : > { %v2191_v25 = vpop.f32.mrb[39].mxu0  ;;  %2209 = vmatmul.mubr.bf16.vlgmr.msra.gmra.mrb[40].mxu1 %v1378_v22 }
 0x52f   : > { %2674 = shalt.err (!%p2671_p12)
}
 0x530   : > { %s2675_s3 = scalar_lea.hbm %s3298_s14, 256  ;;  %s2679_s5 = scalar_lea.hbm %s3461_s16, 512 }
 0x531   : > { %p2676_p8 = scmp.ne.s32.totalorder %s3298_s14, %s2675_s3  ;;  %p2680_p1 = scmp.lt.u32.totalorder %s3298_s14, %s3461_s16 }
 0x532   : > { %p2681_p6 = scmp.lt.u32.totalorder %s2679_s5, %s2675_s3  ;;  %p2683_p5 = scmp.lt.u32.totalorder %s2675_s3, %s3298_s14 }
 0x533   : > { %p2677_p10 = pnand %p2676_p8, %p3462_p2 }
 0x534   : > { %p2682_p3 = por %p2681_p6, %p2680_p1 }
 0x535   : > { %p2678_p4 = pneg %p2677_p10 }
 0x536   : > { %p2684_p0 = por %p2683_p5, %p2682_p3 }
 0x538   : > { %p2685_p11 = pnand %p2684_p0, %p2678_p4 }
 0x53a   : > { %2688 = shalt.err (!%p2685_p11)
}
 0x53b   : > { %s2788_s26 = smov 128   ;;  %s2789_s22 = smov 8  }
 0x53c   : > { %2347 = dma.vmem_to_hbm [thread:$0]  (%p3462_p2), %s3301_s27, 256, %s3298_s14, %s1494_s7, %s2788_s26, %s2788_s26, %s2789_s22  }
 0x53d   : > { %s464_s20 = scalar_lea.vmem [#allocation14], %s3140_s18  ;;  %s3463_s8 = sld [smem:[#allocation32_spill]] }
 0x53e   : > { %s1507_s11 = sshll.u32 %s464_s20, 4  ;;  %s1489_s14 = scalar_lea.sflag [#allocation4], %s3137_s19  ;;  %s3331_s11 = int_to_ptr.vmem [resolvable:$true] %s1507_s11 }
 0x53f   : > { %s2689_s18 = scalar_lea.vmem %s3331_s11, 256  ;;  %s2790_s27 = smov [#allocation14]  }
 0x540   : > { %p2690_p13 = scmp.ne.s32.totalorder %s3331_s11, %s2689_s18  ;;  %s2693_s7 = sshll.u32 %s2790_s27, 4  ;;  %s2694_s7 = int_to_ptr.vmem [resolvable:$false] %s2693_s7 }
 0x541   : > { %s2695_s15 = scalar_lea.vmem %s2694_s7, 512  ;;  %p2696_p12 = scmp.lt.s32.totalorder %s3331_s11, %s2694_s7 }
 0x542   : > { %p2691_p9 = pnand %p2690_p13, %p3462_p2  ;;  %p2697_p8 = scmp.lt.s32.totalorder %s2695_s15, %s2689_s18 }
 0x543   : > { %s3338_s10 = scalar_lea.hbm %s3463_s8, %s1766_s24 }
 0x544   : > { %p2692_p7 = pneg %p2691_p9  ;;  %p2698_p10 = por %p2697_p8, %p2696_p12 }
 0x546   : > { %p2699_p4 = pnand %p2698_p10, %p2692_p7 }
 0x601   : > { %v1477_v57 = vpop.f32.mrb[40].mxu1 }
 0x602   : > { %1484 = vst [vmem:[%s464_s20] sm:$0xff] %v1477_v57  ;;  %v2210_v26 = vpop.f32.mrb[41].mxu1 }
 0x603   : > { %v1480_v27 = vpop.f32.mrb[42].mxu1 }
 0x604   : > { %1485 = vst [vmem:[%s464_s20 + $0x8] sm:$0xff] %v1480_v27  ;;  %v2211_v28 = vpop.f32.mrb[43].mxu1 }
 0x605   : > { %2702 = shalt.err (!%p2699_p4)
}
 0x606   : > { %s2703_s9 = scalar_lea.hbm %s3338_s10, 256  ;;  %s2707_s3 = scalar_lea.hbm %s3463_s8, 512 }
 0x607   : > { %p2704_p1 = scmp.ne.s32.totalorder %s3338_s10, %s2703_s9  ;;  %p2708_p5 = scmp.lt.u32.totalorder %s3338_s10, %s3463_s8 }
 0x608   : > { %p2709_p0 = scmp.lt.u32.totalorder %s2707_s3, %s2703_s9  ;;  %p2711_p13 = scmp.lt.u32.totalorder %s2703_s9, %s3338_s10 }
 0x609   : > { %p2705_p6 = pnand %p2704_p1, %p3462_p2 }
 0x60a   : > { %p2710_p11 = por %p2709_p0, %p2708_p5 }
 0x60b   : > { %p2706_p3 = pneg %p2705_p6 }
 0x60c   : > { %p2712_p9 = por %p2711_p13, %p2710_p11 }
 0x60e   : > { %p2713_p7 = pnand %p2712_p9, %p2706_p3 }
 0x610   : > { %2716 = shalt.err (!%p2713_p7)
}
 0x611   : > { %2346 = dma.vmem_to_hbm [thread:$0]  (%p3462_p2), %s3331_s11, 256, %s3338_s10, %s1489_s14, %s2788_s26, %s2788_s26, %s2789_s22  }
 0x612 PF: > { %s3464_s5 = sld [smem:[#allocation23_spill]]  ;;  %s3465_s29 = sld [smem:[#allocation25_spill]] }
 0x613   : > { %p3467_p8 = scmp.ge.s32.totalorder %s2771_s30, 2 }
 0x618   : > { %s1538_s13 = sand.u32 1, %s3464_s5   ;;  %p3466_p12 = scmp.ne.s32.totalorder %s3465_s29, 0 }
 0x619   : > { %s1539_s20 = scalar_lea.sflag [#allocation4], %s1538_s13 }
 0x61a   : > { %p2374_p10 = pnand %p3467_p8, %p3466_p12 }
 0x61c   : > { %2750 = dma.done.wait (!%p2374_p10), %s1539_s20, 256  }
 0x61d   : > { %2752 = vsyncadd (!%p2374_p10), %s1539_s20, 4294967040  ;;  %s1548_s23 = scalar_lea.sflag [#allocation16], %s1538_s13 }
 0x61e   : > { %2754 = dma.done.wait (!%p2374_p10), %s1548_s23, 256  }
 0x61f   : > { %2756 = vsyncadd (!%p2374_p10), %s1548_s23, 4294967040  ;;  %s3468_s30 = sld [smem:[#allocation26_spill]]  ;;  %s3469_s19 = sld [smem:[#allocation24_spill]] }
 0x620   : > { %s3470_s29 = sld [smem:[#allocation27_spill]]  ;;  %s3471_s27 = smov %s2763_s28 }
 0x625   : > { %p30_p2 = scmp.ge.s32.totalorder %s3468_s30, 4   ;;  %s3472_s28 = smov %s3469_s19 }
 0x627   :  { %32 = sbr.rel (!%p30_p2) target bundleno = 17 (0x11), region = 150 }
 0x62e   :  { %1553 = vsyncpa [#allocation3], 1 }
 0x62f   :  { %1555 = vsyncpa [#allocation3 + $0x1], 1 }
 0x630   :  { %1556 = vsyncpa [#allocation6], 1 }
 0x631   :  { %1558 = vsyncpa [#allocation6 + $0x1], 1 }
 0x632   :  { %1559 = vsyncpa [#allocation9], 1 }
 0x633   :  { %1560 = vsyncpa [#allocation12], 1 }
 0x634   :  { %1561 = vsyncpa [#allocation4], 1 }
 0x635   :  { %1563 = vsyncpa [#allocation4 + $0x1], 1 }
 0x636   :  { %1564 = vsyncpa [#allocation16], 1 }
 0x637   :  { %1566 = vsyncpa [#allocation16 + $0x1], 1 }

</bundles_post_ra>
